<compile_context>
chip_gen: v5e
topology: v5e:2x2
jax: 0.10.0
libtpu: 0.0.40
codegen_flags: <defaults>
</compile_context>

<pallas_src>
import functools

import numpy as np
import jax
import jax.numpy as jnp
from jax import lax
from jax.experimental import pallas as pl
from jax.experimental.pallas import tpu as pltpu


H = W = 32
C_IN, C_PAD = 3, 4            # input channels, zero-padded to 4 -> 128 lanes
C1, C2 = 6, 12
K = 5
OW1, OW2 = 28, 10             # conv output widths
PH2 = 5                       # pooled spatial size after second pool
LANES_X = W * C_PAD           # 128
LANES_1 = OW1 * C1            # 168
LANES_P1 = (OW1 - 1) * C1     # 162
LANES_2 = OW2 * C2            # 120
LANES_P2 = (OW2 - 1) * C2     # 108
FC1_N, FC2_N = 120, 60
OUT_PAD = 128                 # lane-dense padded logits (real logits = 10)


# ----------------------------------------------------------------------------
# The fused kernel: one grid step == GB whole images
# ----------------------------------------------------------------------------
def _network1_kernel(x_ref, w1_ref, b1_ref, w2_ref, b2_ref,
                     wf1_ref, bf1_ref, wf2_ref, bf2_ref, wo_ref, bo_ref,
                     o_ref, *, gb):
    f32, bf16 = jnp.float32, jnp.bfloat16
    nr = gb * H                                   # stretched rows in this block

    x = x_ref[...]                                # (nr, 128) bf16

    # ---- conv1 + bias + ReLU: 5 kernel-row bands fused along K -------------
    l1 = nr - (K - 1)
    x5 = jnp.concatenate([x[ki:ki + l1, :] for ki in range(K)], axis=1)  # (l1, 640)
    a1 = jnp.dot(x5, w1_ref[...], preferred_element_type=f32) + b1_ref[...]
    a1 = jnp.maximum(a1, 0.0)                     # (l1, 168) f32

    # ---- maxpool1 (2x2/2): row-pair max + lane-pair max ---------------------
    rp1 = jnp.maximum(a1[0:l1 - 1, :], a1[1:l1, :])
    cm1 = jnp.maximum(rp1[:, 0:LANES_P1], rp1[:, C1:LANES_1])  # (l1-1, 162) f32
    # pool1[b,p,q,c] sits at row b*32+2p, lane 12q+c (odd-q lanes unused by w2).

    # ---- conv2 + bias + ReLU: stride-2 row bands fused along K --------------
    l2 = (l1 - 1) - 2 * (K - 1)
    c5 = jnp.concatenate([cm1[2 * ki:2 * ki + l2, :] for ki in range(K)],
                         axis=1).astype(bf16)     # (l2, 810)
    a2 = jnp.dot(c5, w2_ref[...], preferred_element_type=f32) + b2_ref[...]
    a2 = jnp.maximum(a2, 0.0)                     # (l2, 120) f32

    # ---- maxpool2 ------------------------------------------------------------
    rp2 = jnp.maximum(a2[0:l2 - 2, :], a2[2:l2, :])
    cm2 = jnp.maximum(rp2[:, 0:LANES_P2], rp2[:, C2:LANES_2])  # (l2-2, 108) f32
    # pool2[b,p2,q2,c2] sits at row b*32+4*p2, lane 24*q2+c2.

    # ---- fc1 + bias + ReLU: stride-4 row bands fused along K ----------------
    l3 = (l2 - 2) - 4 * (PH2 - 1)
    p5 = jnp.concatenate([cm2[4 * p:4 * p + l3, :] for p in range(PH2)],
                         axis=1).astype(bf16)     # (l3, 540)
    h1 = jnp.dot(p5, wf1_ref[...], preferred_element_type=f32) + bf1_ref[...]
    h1 = jnp.maximum(h1, 0.0)                     # (l3, 120) f32

    # ---- compact to one row per image (row b*32) via exact 0/1 matmul -------
    r = lax.broadcasted_iota(jnp.int32, (gb, l3), 1)
    g = lax.broadcasted_iota(jnp.int32, (gb, l3), 0)
    sel = (r == g * H).astype(f32)
    h1c = jnp.dot(sel, h1, preferred_element_type=f32)         # (gb, 120)

    # ---- fc2 + ReLU, output head on compacted rows; single dense store ------
    h2 = jnp.dot(h1c.astype(bf16), wf2_ref[...], preferred_element_type=f32)
    h2 = jnp.maximum(h2 + bf2_ref[...], 0.0)                   # (gb, 60)
    logits = jnp.dot(h2.astype(bf16), wo_ref[...], preferred_element_type=f32)
    o_ref[...] = logits + bo_ref[...]                          # (gb, 128)


def _pick_block_batch(batch):
    for gb in (32, 16, 8):          # multiples of 8 -> legal sublane blocks
        if batch % gb == 0:
            return gb
    return batch                    # small/odd batch: single full-array block


def network1_forward(x_nchw, packed):
    """Fused Network1 forward.  x_nchw: (B, 3, 32, 32); returns (B, 10)."""
    B = x_nchw.shape[0]
    gb = _pick_block_batch(B)

    # NCHW -> rows=(b,h), lanes=(w, c padded 3->4) = exactly 128 lanes, bf16.
    x = jnp.transpose(x_nchw, (0, 2, 3, 1))                    # (B, 32, 32, 3)
    x = jnp.pad(x, ((0, 0), (0, 0), (0, 0), (0, C_PAD - C_IN)))
    x2d = x.reshape(B * H, LANES_X).astype(jnp.bfloat16)

    flops = int(B * H * 2 * (K * LANES_X * LANES_1
                             + K * LANES_P1 * LANES_2
                             + PH2 * LANES_P2 * FC1_N))
    bytes_accessed = int(B * H * LANES_X * 2 + B * OUT_PAD * 4 + 600_000)

    out = pl.pallas_call(
        functools.partial(_network1_kernel, gb=gb),
        out_shape=jax.ShapeDtypeStruct((B, OUT_PAD), jnp.float32),
        grid=(B // gb,),
        in_specs=[
            pl.BlockSpec((gb * H, LANES_X), lambda i: (i, 0)),        # x block
            pl.BlockSpec((K * LANES_X, LANES_1), lambda i: (0, 0)),   # w1 (resident)
            pl.BlockSpec((1, LANES_1), lambda i: (0, 0)),             # b1
            pl.BlockSpec((K * LANES_P1, LANES_2), lambda i: (0, 0)),  # w2
            pl.BlockSpec((1, LANES_2), lambda i: (0, 0)),             # b2
            pl.BlockSpec((PH2 * LANES_P2, FC1_N), lambda i: (0, 0)),  # wf1
            pl.BlockSpec((1, FC1_N), lambda i: (0, 0)),               # bf1
            pl.BlockSpec((FC1_N, FC2_N), lambda i: (0, 0)),           # wf2
            pl.BlockSpec((1, FC2_N), lambda i: (0, 0)),               # bf2
            pl.BlockSpec((FC2_N, OUT_PAD), lambda i: (0, 0)),         # wo (padded)
            pl.BlockSpec((1, OUT_PAD), lambda i: (0, 0)),             # bo (padded)
        ],
        out_specs=pl.BlockSpec((gb, OUT_PAD), lambda i: (i, 0)),
        compiler_params=pltpu.CompilerParams(
            dimension_semantics=("parallel",),           # megacore on v7x
            vmem_limit_bytes=32 * 1024 * 1024),
        cost_estimate=pl.CostEstimate(flops=flops, transcendentals=0,
                                      bytes_accessed=bytes_accessed),
    )(x2d, packed["w1"], packed["b1"], packed["w2"], packed["b2"],
      packed["wf1"], packed["bf1"], packed["wf2"], packed["bf2"],
      packed["wo"], packed["bo"])
    return out[:, :10]


# ----------------------------------------------------------------------------
# One-time weight preparation (outside the jitted forward)
# ----------------------------------------------------------------------------
def prepare_params(params):
    w1 = np.asarray(params["conv1_w"], np.float32)                  # (6,3,5,5)
    w2 = np.asarray(params["conv2_w"], np.float32)                  # (12,6,5,5)
    wf1 = np.asarray(params["fc1_w"], np.float32).reshape(FC1_N, C2, PH2, PH2)

    # conv1 bands: input lane w*4+ci (ci=3 stays zero) -> output lane ow*6+co.
    W1E = np.zeros((K, LANES_X, LANES_1), np.float32)
    for ki in range(K):
        for kj in range(K):
            blk = w1[:, :, ki, kj].T                                 # (ci, co)
            for ow in range(OW1):
                ww = ow + kj
                W1E[ki, ww * C_PAD:ww * C_PAD + C_IN,
                    ow * C1:ow * C1 + C1] = blk

    # conv2 bands: pool1 lane 12q+c1 -> lane ow2*12+c2 (odd-column lanes zero).
    W2E = np.zeros((K, LANES_P1, LANES_2), np.float32)
    for ki in range(K):
        for kj in range(K):
            blk = w2[:, :, ki, kj].T                                 # (c1, c2)
            for ow2 in range(OW2):
                q = ow2 + kj
                W2E[ki, 12 * q:12 * q + C1, ow2 * C2:ow2 * C2 + C2] = blk

    # fc1 bands: folds torch NCHW flatten (j = c2*25 + p2*5 + q2) and pool2's
    # lane layout (24*q2 + c2); one band per pooled row p2.
    WF1E = np.zeros((PH2, LANES_P2, FC1_N), np.float32)
    for p2 in range(PH2):
        for q2 in range(PH2):
            WF1E[p2, 24 * q2:24 * q2 + C2, :] = wf1[:, :, p2, q2].T  # (c2, o)

    wo = np.zeros((FC2_N, OUT_PAD), np.float32)
    wo[:, :10] = np.asarray(params["out_w"], np.float32).T
    bo = np.zeros((1, OUT_PAD), np.float32)
    bo[0, :10] = np.asarray(params["out_b"], np.float32)

    bf16 = jnp.bfloat16
    return {
        "w1": jnp.asarray(W1E.reshape(K * LANES_X, LANES_1), bf16),
        "b1": jnp.asarray(np.tile(np.asarray(params["conv1_b"], np.float32),
                                  OW1).reshape(1, LANES_1)),
        "w2": jnp.asarray(W2E.reshape(K * LANES_P1, LANES_2), bf16),
        "b2": jnp.asarray(np.tile(np.asarray(params["conv2_b"], np.float32),
                                  OW2).reshape(1, LANES_2)),
        "wf1": jnp.asarray(WF1E.reshape(PH2 * LANES_P2, FC1_N), bf16),
        "bf1": jnp.asarray(np.asarray(params["fc1_b"], np.float32).reshape(1, FC1_N)),
        "wf2": jnp.asarray(np.asarray(params["fc2_w"], np.float32).T, bf16),
        "bf2": jnp.asarray(np.asarray(params["fc2_b"], np.float32).reshape(1, FC2_N)),
        "wo": jnp.asarray(wo, bf16),
        "bo": jnp.asarray(bo),
    }


# ----------------------------------------------------------------------------
# Deterministic parameter init (PyTorch-default-style uniform(+-1/sqrt(fan_in)))
# ----------------------------------------------------------------------------
def init_params(key):
    def u(k, shape, fan_in):
        bound = 1.0 / (fan_in ** 0.5)
        return jax.random.uniform(k, shape, jnp.float32, -bound, bound)

    ks = jax.random.split(key, 10)
    return {
        "conv1_w": u(ks[0], (6, 3, 5, 5), 3 * 25),
        "conv1_b": u(ks[1], (6,), 3 * 25),
        "conv2_w": u(ks[2], (12, 6, 5, 5), 6 * 25),
        "conv2_b": u(ks[3], (12,), 6 * 25),
        "fc1_w": u(ks[4], (120, 300), 300),
        "fc1_b": u(ks[5], (120,), 300),
        "fc2_w": u(ks[6], (60, 120), 120),
        "fc2_b": u(ks[7], (60,), 120),
        "out_w": u(ks[8], (10, 60), 60),
        "out_b": u(ks[9], (10,), 60),
    }


# ----------------------------------------------------------------------------
# Pure-JAX reference (f32) for numerical cross-check
# ----------------------------------------------------------------------------
def reference_forward(x, p):
    def conv(t, w, b):
        y = lax.conv_general_dilated(t, w, (1, 1), "VALID",
                                     dimension_numbers=("NCHW", "OIHW", "NCHW"))
        return jax.nn.relu(y + b.reshape(1, -1, 1, 1))

    def pool(t):
        return lax.reduce_window(t, -jnp.inf, lax.max,
                                 (1, 1, 2, 2), (1, 1, 2, 2), "VALID")

    t = pool(conv(x, p["conv1_w"], p["conv1_b"]))
    t = pool(conv(t, p["conv2_w"], p["conv2_b"]))
    t = t.reshape(-1, 12 * 5 * 5)
    t = jax.nn.relu(t @ p["fc1_w"].T + p["fc1_b"])
    t = jax.nn.relu(t @ p["fc2_w"].T + p["fc2_b"])
    return t @ p["out_w"].T + p["out_b"]


if __name__ == "__main__":
    key = jax.random.PRNGKey(0)
    k_x, k_p = jax.random.split(key)
    x = jax.random.normal(k_x, (2, 3, 32, 32), jnp.float32)   # NCHW, like torch
    params = init_params(k_p)
    packed = prepare_params(params)                           # one-time relayout

    fwd = jax.jit(network1_forward)
    out = jax.block_until_ready(fwd(x, packed))
    assert out.shape == (2, 10), out.shape

    ref = jax.block_until_ready(jax.jit(reference_forward)(x, params))
    # bf16 matmul operands (f32 accumulation) -> slightly looser tolerance.
    err = float(jnp.max(jnp.abs(out - ref)))
    assert jnp.allclose(out, ref, atol=3e-2, rtol=3e-2), err

    print("KERNEL_OK")
</pallas_src>

<mosaic_0001>
module attributes {stable_mosaic.version = 11 : i64} {
  func.func @_network1_kernel(%arg0: i32, %arg1: memref<64x128xbf16, #tpu.memory_space<vmem>>, %arg2: memref<640x168xbf16, #tpu.memory_space<vmem>>, %arg3: memref<1x168xf32, #tpu.memory_space<vmem>>, %arg4: memref<810x120xbf16, #tpu.memory_space<vmem>>, %arg5: memref<1x120xf32, #tpu.memory_space<vmem>>, %arg6: memref<540x120xbf16, #tpu.memory_space<vmem>>, %arg7: memref<1x120xf32, #tpu.memory_space<vmem>>, %arg8: memref<120x60xbf16, #tpu.memory_space<vmem>>, %arg9: memref<1x60xf32, #tpu.memory_space<vmem>>, %arg10: memref<60x128xbf16, #tpu.memory_space<vmem>>, %arg11: memref<1x128xf32, #tpu.memory_space<vmem>>, %arg12: memref<2x128xf32, #tpu.memory_space<vmem>>) attributes {dimension_semantics = [#tpu.dimension_semantics<parallel>], iteration_bounds = array<i64: 1>, scalar_prefetch = 0 : i64, scratch_operands = 0 : i64, tpu.core_type = #tpu.core_type<tc>, window_params = [{transform_indices = @transform_0, window_bounds = array<i64: 64, 128>}, {pipeline_mode = #tpu.pipeline_mode<synchronous>, transform_indices = @transform_1, window_bounds = array<i64: 640, 168>}, {pipeline_mode = #tpu.pipeline_mode<synchronous>, transform_indices = @transform_2, window_bounds = array<i64: 1, 168>}, {pipeline_mode = #tpu.pipeline_mode<synchronous>, transform_indices = @transform_3, window_bounds = array<i64: 810, 120>}, {pipeline_mode = #tpu.pipeline_mode<synchronous>, transform_indices = @transform_4, window_bounds = array<i64: 1, 120>}, {pipeline_mode = #tpu.pipeline_mode<synchronous>, transform_indices = @transform_5, window_bounds = array<i64: 540, 120>}, {pipeline_mode = #tpu.pipeline_mode<synchronous>, transform_indices = @transform_6, window_bounds = array<i64: 1, 120>}, {pipeline_mode = #tpu.pipeline_mode<synchronous>, transform_indices = @transform_7, window_bounds = array<i64: 120, 60>}, {pipeline_mode = #tpu.pipeline_mode<synchronous>, transform_indices = @transform_8, window_bounds = array<i64: 1, 60>}, {pipeline_mode = #tpu.pipeline_mode<synchronous>, transform_indices = @transform_9, window_bounds = array<i64: 60, 128>}, {pipeline_mode = #tpu.pipeline_mode<synchronous>, transform_indices = @transform_10, window_bounds = array<i64: 1, 128>}, {transform_indices = @transform_11, window_bounds = array<i64: 2, 128>}]} {
    %c0 = arith.constant 0 : index
    %c0_0 = arith.constant 0 : index
    %0 = vector.load %arg1[%c0, %c0_0] : memref<64x128xbf16, #tpu.memory_space<vmem>>, vector<64x128xbf16>
    %1 = vector.extract_strided_slice %0 {offsets = [0, 0], sizes = [60, 128], strides = [1, 1]} : vector<64x128xbf16> to vector<60x128xbf16>
    %2 = vector.extract_strided_slice %0 {offsets = [1, 0], sizes = [60, 128], strides = [1, 1]} : vector<64x128xbf16> to vector<60x128xbf16>
    %3 = vector.extract_strided_slice %0 {offsets = [2, 0], sizes = [60, 128], strides = [1, 1]} : vector<64x128xbf16> to vector<60x128xbf16>
    %4 = vector.extract_strided_slice %0 {offsets = [3, 0], sizes = [60, 128], strides = [1, 1]} : vector<64x128xbf16> to vector<60x128xbf16>
    %5 = vector.extract_strided_slice %0 {offsets = [4, 0], sizes = [60, 128], strides = [1, 1]} : vector<64x128xbf16> to vector<60x128xbf16>
    %6 = tpu.concatenate %1, %2, %3, %4, %5 in 1 : vector<60x128xbf16>, vector<60x128xbf16>, vector<60x128xbf16>, vector<60x128xbf16>, vector<60x128xbf16> -> vector<60x640xbf16>
    %c0_1 = arith.constant 0 : index
    %c0_2 = arith.constant 0 : index
    %7 = vector.load %arg2[%c0_1, %c0_2] : memref<640x168xbf16, #tpu.memory_space<vmem>>, vector<640x168xbf16>
    %cst = arith.constant dense<0.000000e+00> : vector<60x168xf32>
    %8 = tpu.matmul %6, %7, %cst {dimension_numbers = #tpu.dot_dimension_numbers<[1], [0], [0], [1], [0, 0, 1, 1], [], []>} : vector<60x640xbf16>, vector<640x168xbf16>, vector<60x168xf32> -> vector<60x168xf32>
    %c0_3 = arith.constant 0 : index
    %c0_4 = arith.constant 0 : index
    %9 = vector.load %arg3[%c0_3, %c0_4] : memref<1x168xf32, #tpu.memory_space<vmem>>, vector<1x168xf32>
    %10 = vector.broadcast %9 : vector<1x168xf32> to vector<60x168xf32>
    %11 = arith.addf %8, %10 : vector<60x168xf32>
    %cst_5 = arith.constant 0.000000e+00 : f32
    %12 = vector.broadcast %cst_5 : f32 to vector<60x168xf32>
    %13 = arith.maximumf %11, %12 : vector<60x168xf32>
    %14 = vector.extract_strided_slice %13 {offsets = [0, 0], sizes = [59, 168], strides = [1, 1]} : vector<60x168xf32> to vector<59x168xf32>
    %15 = vector.extract_strided_slice %13 {offsets = [1, 0], sizes = [59, 168], strides = [1, 1]} : vector<60x168xf32> to vector<59x168xf32>
    %16 = arith.maximumf %14, %15 : vector<59x168xf32>
    %17 = vector.extract_strided_slice %16 {offsets = [0, 0], sizes = [59, 162], strides = [1, 1]} : vector<59x168xf32> to vector<59x162xf32>
    %18 = vector.extract_strided_slice %16 {offsets = [0, 6], sizes = [59, 162], strides = [1, 1]} : vector<59x168xf32> to vector<59x162xf32>
    %19 = arith.maximumf %17, %18 : vector<59x162xf32>
    %20 = vector.extract_strided_slice %19 {offsets = [0, 0], sizes = [51, 162], strides = [1, 1]} : vector<59x162xf32> to vector<51x162xf32>
    %21 = vector.extract_strided_slice %19 {offsets = [2, 0], sizes = [51, 162], strides = [1, 1]} : vector<59x162xf32> to vector<51x162xf32>
    %22 = vector.extract_strided_slice %19 {offsets = [4, 0], sizes = [51, 162], strides = [1, 1]} : vector<59x162xf32> to vector<51x162xf32>
    %23 = vector.extract_strided_slice %19 {offsets = [6, 0], sizes = [51, 162], strides = [1, 1]} : vector<59x162xf32> to vector<51x162xf32>
    %24 = vector.extract_strided_slice %19 {offsets = [8, 0], sizes = [51, 162], strides = [1, 1]} : vector<59x162xf32> to vector<51x162xf32>
    %25 = tpu.concatenate %20, %21, %22, %23, %24 in 1 : vector<51x162xf32>, vector<51x162xf32>, vector<51x162xf32>, vector<51x162xf32>, vector<51x162xf32> -> vector<51x810xf32>
    %26 = arith.truncf %25 : vector<51x810xf32> to vector<51x810xbf16>
    %c0_6 = arith.constant 0 : index
    %c0_7 = arith.constant 0 : index
    %27 = vector.load %arg4[%c0_6, %c0_7] : memref<810x120xbf16, #tpu.memory_space<vmem>>, vector<810x120xbf16>
    %cst_8 = arith.constant dense<0.000000e+00> : vector<51x120xf32>
    %28 = tpu.matmul %26, %27, %cst_8 {dimension_numbers = #tpu.dot_dimension_numbers<[1], [0], [0], [1], [0, 0, 1, 1], [], []>} : vector<51x810xbf16>, vector<810x120xbf16>, vector<51x120xf32> -> vector<51x120xf32>
    %c0_9 = arith.constant 0 : index
    %c0_10 = arith.constant 0 : index
    %29 = vector.load %arg5[%c0_9, %c0_10] : memref<1x120xf32, #tpu.memory_space<vmem>>, vector<1x120xf32>
    %30 = vector.broadcast %29 : vector<1x120xf32> to vector<51x120xf32>
    %31 = arith.addf %28, %30 : vector<51x120xf32>
    %cst_11 = arith.constant 0.000000e+00 : f32
    %32 = vector.broadcast %cst_11 : f32 to vector<51x120xf32>
    %33 = arith.maximumf %31, %32 : vector<51x120xf32>
    %34 = vector.extract_strided_slice %33 {offsets = [0, 0], sizes = [49, 120], strides = [1, 1]} : vector<51x120xf32> to vector<49x120xf32>
    %35 = vector.extract_strided_slice %33 {offsets = [2, 0], sizes = [49, 120], strides = [1, 1]} : vector<51x120xf32> to vector<49x120xf32>
    %36 = arith.maximumf %34, %35 : vector<49x120xf32>
    %37 = vector.extract_strided_slice %36 {offsets = [0, 0], sizes = [49, 108], strides = [1, 1]} : vector<49x120xf32> to vector<49x108xf32>
    %38 = vector.extract_strided_slice %36 {offsets = [0, 12], sizes = [49, 108], strides = [1, 1]} : vector<49x120xf32> to vector<49x108xf32>
    %39 = arith.maximumf %37, %38 : vector<49x108xf32>
    %40 = vector.extract_strided_slice %39 {offsets = [0, 0], sizes = [33, 108], strides = [1, 1]} : vector<49x108xf32> to vector<33x108xf32>
    %41 = vector.extract_strided_slice %39 {offsets = [4, 0], sizes = [33, 108], strides = [1, 1]} : vector<49x108xf32> to vector<33x108xf32>
    %42 = vector.extract_strided_slice %39 {offsets = [8, 0], sizes = [33, 108], strides = [1, 1]} : vector<49x108xf32> to vector<33x108xf32>
    %43 = vector.extract_strided_slice %39 {offsets = [12, 0], sizes = [33, 108], strides = [1, 1]} : vector<49x108xf32> to vector<33x108xf32>
    %44 = vector.extract_strided_slice %39 {offsets = [16, 0], sizes = [33, 108], strides = [1, 1]} : vector<49x108xf32> to vector<33x108xf32>
    %45 = tpu.concatenate %40, %41, %42, %43, %44 in 1 : vector<33x108xf32>, vector<33x108xf32>, vector<33x108xf32>, vector<33x108xf32>, vector<33x108xf32> -> vector<33x540xf32>
    %46 = arith.truncf %45 : vector<33x540xf32> to vector<33x540xbf16>
    %c0_12 = arith.constant 0 : index
    %c0_13 = arith.constant 0 : index
    %47 = vector.load %arg6[%c0_12, %c0_13] : memref<540x120xbf16, #tpu.memory_space<vmem>>, vector<540x120xbf16>
    %cst_14 = arith.constant dense<0.000000e+00> : vector<33x120xf32>
    %48 = tpu.matmul %46, %47, %cst_14 {dimension_numbers = #tpu.dot_dimension_numbers<[1], [0], [0], [1], [0, 0, 1, 1], [], []>} : vector<33x540xbf16>, vector<540x120xbf16>, vector<33x120xf32> -> vector<33x120xf32>
    %c0_15 = arith.constant 0 : index
    %c0_16 = arith.constant 0 : index
    %49 = vector.load %arg7[%c0_15, %c0_16] : memref<1x120xf32, #tpu.memory_space<vmem>>, vector<1x120xf32>
    %50 = vector.broadcast %49 : vector<1x120xf32> to vector<33x120xf32>
    %51 = arith.addf %48, %50 : vector<33x120xf32>
    %cst_17 = arith.constant 0.000000e+00 : f32
    %52 = vector.broadcast %cst_17 : f32 to vector<33x120xf32>
    %53 = arith.maximumf %51, %52 : vector<33x120xf32>
    %54 = tpu.iota {dimensions = array<i32: 1>} : vector<2x33xi32>
    %55 = tpu.iota {dimensions = array<i32: 0>} : vector<2x33xi32>
    %c32_i32 = arith.constant 32 : i32
    %56 = vector.broadcast %c32_i32 : i32 to vector<2x33xi32>
    %57 = arith.muli %55, %56 : vector<2x33xi32>
    %58 = arith.cmpi eq, %54, %57 : vector<2x33xi32>
    %59 = arith.extui %58 : vector<2x33xi1> to vector<2x33xi32>
    %60 = arith.sitofp %59 : vector<2x33xi32> to vector<2x33xf32>
    %cst_18 = arith.constant dense<0.000000e+00> : vector<2x120xf32>
    %61 = tpu.matmul %60, %53, %cst_18 {dimension_numbers = #tpu.dot_dimension_numbers<[1], [0], [0], [1], [0, 0, 1, 1], [], []>} : vector<2x33xf32>, vector<33x120xf32>, vector<2x120xf32> -> vector<2x120xf32>
    %62 = arith.truncf %61 : vector<2x120xf32> to vector<2x120xbf16>
    %c0_19 = arith.constant 0 : index
    %c0_20 = arith.constant 0 : index
    %63 = vector.load %arg8[%c0_19, %c0_20] : memref<120x60xbf16, #tpu.memory_space<vmem>>, vector<120x60xbf16>
    %cst_21 = arith.constant dense<0.000000e+00> : vector<2x60xf32>
    %64 = tpu.matmul %62, %63, %cst_21 {dimension_numbers = #tpu.dot_dimension_numbers<[1], [0], [0], [1], [0, 0, 1, 1], [], []>} : vector<2x120xbf16>, vector<120x60xbf16>, vector<2x60xf32> -> vector<2x60xf32>
    %c0_22 = arith.constant 0 : index
    %c0_23 = arith.constant 0 : index
    %65 = vector.load %arg9[%c0_22, %c0_23] : memref<1x60xf32, #tpu.memory_space<vmem>>, vector<1x60xf32>
    %66 = vector.broadcast %65 : vector<1x60xf32> to vector<2x60xf32>
    %67 = arith.addf %64, %66 : vector<2x60xf32>
    %cst_24 = arith.constant 0.000000e+00 : f32
    %68 = vector.broadcast %cst_24 : f32 to vector<2x60xf32>
    %69 = arith.maximumf %67, %68 : vector<2x60xf32>
    %70 = arith.truncf %69 : vector<2x60xf32> to vector<2x60xbf16>
    %c0_25 = arith.constant 0 : index
    %c0_26 = arith.constant 0 : index
    %71 = vector.load %arg10[%c0_25, %c0_26] : memref<60x128xbf16, #tpu.memory_space<vmem>>, vector<60x128xbf16>
    %cst_27 = arith.constant dense<0.000000e+00> : vector<2x128xf32>
    %72 = tpu.matmul %70, %71, %cst_27 {dimension_numbers = #tpu.dot_dimension_numbers<[1], [0], [0], [1], [0, 0, 1, 1], [], []>} : vector<2x60xbf16>, vector<60x128xbf16>, vector<2x128xf32> -> vector<2x128xf32>
    %c0_28 = arith.constant 0 : index
    %c0_29 = arith.constant 0 : index
    %73 = vector.load %arg11[%c0_28, %c0_29] : memref<1x128xf32, #tpu.memory_space<vmem>>, vector<1x128xf32>
    %74 = vector.broadcast %73 : vector<1x128xf32> to vector<2x128xf32>
    %75 = arith.addf %72, %74 : vector<2x128xf32>
    %c0_30 = arith.constant 0 : index
    %c0_31 = arith.constant 0 : index
    %76 = vector.load %arg12[%c0_30, %c0_31] : memref<2x128xf32, #tpu.memory_space<vmem>>, vector<2x128xf32>
    tpu.vector_store %arg12[%c0_30, %c0_31], %75 {strides = array<i32>} : memref<2x128xf32, #tpu.memory_space<vmem>>, vector<2x128xf32>,
    return
  }
  func.func @transform_0(%arg0: i32) -> (i32, i32) {
    %c0_i32 = arith.constant 0 : i32
    %c0_i32_0 = arith.constant 0 : i32
    return %arg0, %c0_i32 : i32, i32
  }
  func.func @transform_1(%arg0: i32) -> (i32, i32) {
    %c0_i32 = arith.constant 0 : i32
    %c0_i32_0 = arith.constant 0 : i32
    %c0_i32_1 = arith.constant 0 : i32
    return %c0_i32, %c0_i32_0 : i32, i32
  }
  func.func @transform_2(%arg0: i32) -> (i32, i32) {
    %c0_i32 = arith.constant 0 : i32
    %c0_i32_0 = arith.constant 0 : i32
    %c0_i32_1 = arith.constant 0 : i32
    return %c0_i32, %c0_i32_0 : i32, i32
  }
  func.func @transform_3(%arg0: i32) -> (i32, i32) {
    %c0_i32 = arith.constant 0 : i32
    %c0_i32_0 = arith.constant 0 : i32
    %c0_i32_1 = arith.constant 0 : i32
    return %c0_i32, %c0_i32_0 : i32, i32
  }
  func.func @transform_4(%arg0: i32) -> (i32, i32) {
    %c0_i32 = arith.constant 0 : i32
    %c0_i32_0 = arith.constant 0 : i32
    %c0_i32_1 = arith.constant 0 : i32
    return %c0_i32, %c0_i32_0 : i32, i32
  }
  func.func @transform_5(%arg0: i32) -> (i32, i32) {
    %c0_i32 = arith.constant 0 : i32
    %c0_i32_0 = arith.constant 0 : i32
    %c0_i32_1 = arith.constant 0 : i32
    return %c0_i32, %c0_i32_0 : i32, i32
  }
  func.func @transform_6(%arg0: i32) -> (i32, i32) {
    %c0_i32 = arith.constant 0 : i32
    %c0_i32_0 = arith.constant 0 : i32
    %c0_i32_1 = arith.constant 0 : i32
    return %c0_i32, %c0_i32_0 : i32, i32
  }
  func.func @transform_7(%arg0: i32) -> (i32, i32) {
    %c0_i32 = arith.constant 0 : i32
    %c0_i32_0 = arith.constant 0 : i32
    %c0_i32_1 = arith.constant 0 : i32
    return %c0_i32, %c0_i32_0 : i32, i32
  }
  func.func @transform_8(%arg0: i32) -> (i32, i32) {
    %c0_i32 = arith.constant 0 : i32
    %c0_i32_0 = arith.constant 0 : i32
    %c0_i32_1 = arith.constant 0 : i32
    return %c0_i32, %c0_i32_0 : i32, i32
  }
  func.func @transform_9(%arg0: i32) -> (i32, i32) {
    %c0_i32 = arith.constant 0 : i32
    %c0_i32_0 = arith.constant 0 : i32
    %c0_i32_1 = arith.constant 0 : i32
    return %c0_i32, %c0_i32_0 : i32, i32
  }
  func.func @transform_10(%arg0: i32) -> (i32, i32) {
    %c0_i32 = arith.constant 0 : i32
    %c0_i32_0 = arith.constant 0 : i32
    %c0_i32_1 = arith.constant 0 : i32
    return %c0_i32, %c0_i32_0 : i32, i32
  }
  func.func @transform_11(%arg0: i32) -> (i32, i32) {
    %c0_i32 = arith.constant 0 : i32
    %c0_i32_0 = arith.constant 0 : i32
    return %arg0, %c0_i32 : i32, i32
  }
}

</mosaic_0001>

<bundles_post_ra>
// kernel: network1_forward.1
= control target key start
LH: loop header
LB: loop body
LE: loop exit
PB: predicated region body
PF: predicated region fallthrough
CT: control target
= control target key end

     0   :  { %s5716_s0 = inlined_call_operand.vmem [shape: bf16[64,128], index: 0, kind: input, shape index: {}]   ;;  %s5717_s1 = inlined_call_operand.vmem [shape: bf16[640,168], index: 1, kind: input, shape index: {}]   ;;  %s5718_s2 = inlined_call_operand.vmem [shape: f32[1,168], index: 2, kind: input, shape index: {}]   ;;  %s5719_s3 = inlined_call_operand.vmem [shape: bf16[810,120], index: 3, kind: input, shape index: {}]   ;;  %s5720_s4 = inlined_call_operand.vmem [shape: f32[1,120], index: 4, kind: input, shape index: {}]   ;;  %s5721_s5 = inlined_call_operand.vmem [shape: bf16[540,120], index: 5, kind: input, shape index: {}]   ;;  %s5722_s6 = inlined_call_operand.vmem [shape: f32[1,120], index: 6, kind: input, shape index: {}]   ;;  %s5723_s7 = inlined_call_operand.vmem [shape: bf16[120,60], index: 7, kind: input, shape index: {}]   ;;  %s5724_s8 = inlined_call_operand.vmem [shape: f32[1,60], index: 8, kind: input, shape index: {}]   ;;  %s5725_s9 = inlined_call_operand.vmem [shape: bf16[60,128], index: 9, kind: input, shape index: {}]   ;;  %s5726_s10 = inlined_call_operand.vmem [shape: f32[1,128], index: 10, kind: input, shape index: {}]   ;;  %s5727_s11 = inlined_call_operand.hbm [shape: f32[2,128], index: 11, kind: output, shape index: {}]  }
   0x1   :  { %v2969_v0 = vld [vmem:[%s5717_s1 + $0x70] sm:$0xf]  ;;  %v3646_v1 = vld [vmem:[%s5717_s1 + $0x74] sm:$0xf0]  ;;  %v2961_v11 = vld [vmem:[%s5717_s1 + $0x60] sm:$0xf] }
   0x2   :  { %v3033_v2 = vld [vmem:[%s5717_s1 + $0xf0] sm:$0xf]  ;;  %v2970_v3 = vor.u32 %v3646_v1, %v2969_v0  ;;  %v3662_v4 = vld [vmem:[%s5717_s1 + $0xf4] sm:$0xf0]  ;;  %v3644_v13 = vld [vmem:[%s5717_s1 + $0x64] sm:$0xf0] }
   0x3   :  { %v3097_v5 = vld [vmem:[%s5717_s1 + $0x170] sm:$0xf]  ;;  %v3678_v6 = vld [vmem:[%s5717_s1 + $0x174] sm:$0xf0]  ;;  %v3034_v7 = vor.u32 %v3662_v4, %v3033_v2  ;;  %v3025_v14 = vld [vmem:[%s5717_s1 + $0xe0] sm:$0xf]  ;;  %v2962_v16 = vor.u32 %v3644_v13, %v2961_v11 }
   0x4   :  { %v3098_v8 = vor.u32 %v3678_v6, %v3097_v5  ;;  %v3161_v9 = vld [vmem:[%s5717_s1 + $0x1f0] sm:$0xf]  ;;  %v3694_v10 = vld [vmem:[%s5717_s1 + $0x1f4] sm:$0xf0]  ;;  %638 = vmatpush.bf16.msra.mxu0 %v2970_v3  ;;  %v3660_v15 = vld [vmem:[%s5717_s1 + $0xe4] sm:$0xf0] }
   0x5   :  { %v3162_v12 = vor.u32 %v3694_v10, %v3161_v9  ;;  %667 = vmatpush.bf16.msra.mxu1 %v3034_v7  ;;  %v3026_v17 = vor.u32 %v3660_v15, %v3025_v14  ;;  %v3089_v18 = vld [vmem:[%s5717_s1 + $0x160] sm:$0xf]  ;;  %v3676_v19 = vld [vmem:[%s5717_s1 + $0x164] sm:$0xf0]  ;;  %v2953_v23 = vld [vmem:[%s5717_s1 + $0x50] sm:$0xf] }
   0x6   :  { %696 = vmatpush.bf16.msra.mxu2 %v3098_v8  ;;  %v3153_v20 = vld [vmem:[%s5717_s1 + $0x1e0] sm:$0xf]  ;;  %v3090_v21 = vor.u32 %v3676_v19, %v3089_v18  ;;  %v3692_v22 = vld [vmem:[%s5717_s1 + $0x1e4] sm:$0xf0]  ;;  %v3642_v24 = vld [vmem:[%s5717_s1 + $0x54] sm:$0xf0] }
   0x7   :  { %725 = vmatpush.bf16.msra.mxu3 %v3162_v12  ;;  %v3154_v25 = vor.u32 %v3692_v22, %v3153_v20  ;;  %v3017_v26 = vld [vmem:[%s5717_s1 + $0xd0] sm:$0xf]  ;;  %v3658_v27 = vld [vmem:[%s5717_s1 + $0xd4] sm:$0xf0]  ;;  %v2954_v29 = vor.u32 %v3642_v24, %v2953_v23  ;;  %v2945_v35 = vld [vmem:[%s5717_s1 + $0x40] sm:$0xf] }
   0x8   :  { %v3081_v28 = vld [vmem:[%s5717_s1 + $0x150] sm:$0xf]  ;;  %639 = vmatpush.bf16.msra.mxu0 %v2962_v16  ;;  %v3674_v30 = vld [vmem:[%s5717_s1 + $0x154] sm:$0xf0]  ;;  %v3018_v33 = vor.u32 %v3658_v27, %v3017_v26  ;;  %v3640_v36 = vld [vmem:[%s5717_s1 + $0x44] sm:$0xf0] }
   0x9   :  { %v3145_v31 = vld [vmem:[%s5717_s1 + $0x1d0] sm:$0xf]  ;;  %v3690_v32 = vld [vmem:[%s5717_s1 + $0x1d4] sm:$0xf0]  ;;  %668 = vmatpush.bf16.msra.mxu1 %v3026_v17  ;;  %v3082_v34 = vor.u32 %v3674_v30, %v3081_v28  ;;  %v3009_v37 = vld [vmem:[%s5717_s1 + $0xc0] sm:$0xf]  ;;  %v2946_v44 = vor.u32 %v3640_v36, %v2945_v35 }
   0xa   :  { %697 = vmatpush.bf16.msra.mxu2 %v3090_v21  ;;  %v3146_v38 = vor.u32 %v3690_v32, %v3145_v31  ;;  %v3656_v39 = vld [vmem:[%s5717_s1 + $0xc4] sm:$0xf0]  ;;  %v3073_v40 = vld [vmem:[%s5717_s1 + $0x140] sm:$0xf]  ;;  %v2937_v47 = vld [vmem:[%s5717_s1 + $0x30] sm:$0xf] }
   0xb   :  { %726 = vmatpush.bf16.msra.mxu3 %v3154_v25  ;;  %v3672_v41 = vld [vmem:[%s5717_s1 + $0x144] sm:$0xf0]  ;;  %v3137_v42 = vld [vmem:[%s5717_s1 + $0x1c0] sm:$0xf]  ;;  %v3010_v45 = vor.u32 %v3656_v39, %v3009_v37  ;;  %v3638_v48 = vld [vmem:[%s5717_s1 + $0x34] sm:$0xf0] }
   0xc   :  { %v3688_v43 = vld [vmem:[%s5717_s1 + $0x1c4] sm:$0xf0]  ;;  %640 = vmatpush.bf16.msra.mxu0 %v2954_v29  ;;  %v3074_v46 = vor.u32 %v3672_v41, %v3073_v40  ;;  %v3001_v49 = vld [vmem:[%s5717_s1 + $0xb0] sm:$0xf]  ;;  %v3654_v51 = vld [vmem:[%s5717_s1 + $0xb4] sm:$0xf0]  ;;  %v2938_v56 = vor.u32 %v3638_v48, %v2937_v47 }
   0xd   :  { %669 = vmatpush.bf16.msra.mxu1 %v3018_v33  ;;  %v3138_v50 = vor.u32 %v3688_v43, %v3137_v42  ;;  %v3065_v52 = vld [vmem:[%s5717_s1 + $0x130] sm:$0xf]  ;;  %v3670_v53 = vld [vmem:[%s5717_s1 + $0x134] sm:$0xf0]  ;;  %v3002_v57 = vor.u32 %v3654_v51, %v3001_v49  ;;  %v2929_v59 = vld [vmem:[%s5717_s1 + $0x20] sm:$0xf] }
   0xe   :  { %698 = vmatpush.bf16.msra.mxu2 %v3082_v34  ;;  %v3129_v54 = vld [vmem:[%s5717_s1 + $0x1b0] sm:$0xf]  ;;  %v3686_v55 = vld [vmem:[%s5717_s1 + $0x1b4] sm:$0xf0]  ;;  %v3066_v58 = vor.u32 %v3670_v53, %v3065_v52  ;;  %v3636_v60 = vld [vmem:[%s5717_s1 + $0x24] sm:$0xf0] }
   0xf   :  { %727 = vmatpush.bf16.msra.mxu3 %v3146_v38  ;;  %v2993_v61 = vld [vmem:[%s5717_s1 + $0xa0] sm:$0xf]  ;;  %v3130_v62 = vor.u32 %v3686_v55, %v3129_v54  ;;  %v3652_v63 = vld [vmem:[%s5717_s1 + $0xa4] sm:$0xf0]  ;;  %v2921_v4 = vld [vmem:[%s5717_s1 + $0x10] sm:$0xf]  ;;  %v2930_v5 = vor.u32 %v3636_v60, %v2929_v59 }
  0x10   :  { %641 = vmatpush.bf16.msra.mxu0 %v2946_v44  ;;  %v3057_v0 = vld [vmem:[%s5717_s1 + $0x120] sm:$0xf]  ;;  %v3668_v1 = vld [vmem:[%s5717_s1 + $0x124] sm:$0xf0]  ;;  %v3634_v6 = vld [vmem:[%s5717_s1 + $0x14] sm:$0xf0]  ;;  %v2994_v9 = vor.u32 %v3652_v63, %v2993_v61 }
  0x11   :  { %670 = vmatpush.bf16.msra.mxu1 %v3010_v45  ;;  %v3121_v2 = vld [vmem:[%s5717_s1 + $0x1a0] sm:$0xf]  ;;  %v3684_v3 = vld [vmem:[%s5717_s1 + $0x1a4] sm:$0xf0]  ;;  %v2985_v7 = vld [vmem:[%s5717_s1 + $0x90] sm:$0xf]  ;;  %v3058_v10 = vor.u32 %v3668_v1, %v3057_v0  ;;  %v2922_v24 = vor.u32 %v3634_v6, %v2921_v4 }
  0x12   :  { %699 = vmatpush.bf16.msra.mxu2 %v3074_v46  ;;  %v3650_v8 = vld [vmem:[%s5717_s1 + $0x94] sm:$0xf0]  ;;  %v3049_v11 = vld [vmem:[%s5717_s1 + $0x110] sm:$0xf]  ;;  %v3122_v14 = vor.u32 %v3684_v3, %v3121_v2  ;;  %v4310_v16 = vld [vmem:[%s5716_s0] sm:$0xff] }
  0x13   :  { %728 = vmatpush.bf16.msra.mxu3 %v3138_v50  ;;  %v3666_v12 = vld [vmem:[%s5717_s1 + $0x114] sm:$0xf0]  ;;  %v3113_v13 = vld [vmem:[%s5717_s1 + $0x190] sm:$0xf]  ;;  %v4315_v17 = vld [vmem:[%s5716_s0 + $0x8] sm:$0xff]  ;;  %v74_v25 = vshrl.u32 %v4310_v16, 16  ;;  %v2986_v28 = vor.u32 %v3650_v8, %v2985_v7 }
  0x14   :  { %642 = vmatpush.bf16.msra.mxu0 %v2938_v56  ;;  %v3682_v15 = vld [vmem:[%s5717_s1 + $0x194] sm:$0xf0]  ;;  %v2913_v18 = vld [vmem:[%s5717_s1] sm:$0xf]  ;;  %v3632_v19 = vld [vmem:[%s5717_s1 + $0x4] sm:$0xf0]  ;;  %v3050_v29 = vor.u32 %v3666_v12, %v3049_v11 }
  0x15   :  { %671 = vmatpush.bf16.msra.mxu1 %v3002_v57  ;;  %v2977_v20 = vld [vmem:[%s5717_s1 + $0x80] sm:$0xf]  ;;  %v3648_v21 = vld [vmem:[%s5717_s1 + $0x84] sm:$0xf0]  ;;  %v76_v26 = vshll.u32 %v4310_v16, 16  ;;  %v81_v27 = vshll.u32 %v4315_v17, 16  ;;  %v3114_v32 = vor.u32 %v3682_v15, %v3113_v13 }
  0x16   :  { %700 = vmatpush.bf16.msra.mxu2 %v3066_v58  ;;  %v3041_v22 = vld [vmem:[%s5717_s1 + $0x100] sm:$0xf]  ;;  %v3664_v23 = vld [vmem:[%s5717_s1 + $0x104] sm:$0xf0]  ;;  %v85_v31 = vshrl.u32 %v4315_v17, 16  ;;  %v121_v34 = vrot.slane %v74_v25, 1 }
  0x17   :  { %729 = vmatpush.bf16.msra.mxu3 %v3130_v62  ;;  %v3105_v30 = vld [vmem:[%s5717_s1 + $0x180] sm:$0xf]  ;;  %v78_v33 = vrot.slane %v76_v26, 1  ;;  %v122_v35 = vrot.slane %v76_v26, 2  ;;  %v3680_v36 = vld [vmem:[%s5717_s1 + $0x184] sm:$0xf0] }
  0x18   :  { %643 = vmatpush.bf16.msra.mxu0 %v2930_v5  ;;  %v124_v37 = vrot.slane %v85_v31, 1  ;;  %v125_v38 = vrot.slane %v81_v27, 2 }
  0x19   :  { %672 = vmatpush.bf16.msra.mxu1 %v2994_v9 }
  0x1a   :  { %701 = vmatpush.bf16.msra.mxu2 %v3058_v10 }
  0x1b   :  { %730 = vmatpush.bf16.msra.mxu3 %v3122_v14 }
  0x1c   :  { %16 = vsyncpa [#allocation3], 0  ;;  %644 = vmatpush.bf16.msra.mxu0 %v2922_v24  ;;  %v2914_v39 = vor.u32 %v3632_v19, %v2913_v18  ;;  %v2978_v40 = vor.u32 %v3648_v21, %v2977_v20  ;;  %v3042_v41 = vor.u32 %v3664_v23, %v3041_v22  ;;  %vm72_vm0 = vsmask.f32 7424  ;;  %v4350_v42 = vld [vmem:[%s5716_s0 + $0x10] sm:$0xff]  ;;  %s4069_s12 = smov 34  }
  0x1d   :  { %673 = vmatpush.bf16.msra.mxu1 %v2986_v28  ;;  %v79_v43 = vor.u32 %v78_v33, %v74_v25  ;;  %v4352_v44 = vrot.slane %v81_v27, 1  ;;  %v109_v45 = vrot.slane %v4310_v16, 1  ;;  %v110_v46 = vrot.slane %v4315_v17, 1  ;;  %v3225_v55 = vld [vmem:[%s5717_s1 + $0x270] sm:$0xf]  ;;  %v4453_v27 = vld [vmem:[%s5716_s0 + $0x18] sm:$0xff] }
  0x1e   :  { %702 = vmatpush.bf16.msra.mxu2 %v3050_v29  ;;  %v3106_v47 = vor.u32 %v3680_v36, %v3105_v30  ;;  %vm108_vm1 = vcmask 1046528   ;;  %v123_v48 = vor.u32 %v122_v35, %v121_v34  ;;  %v4356_v49 = vor.u32 %v125_v38, %v124_v37  ;;  %v3710_v56 = vld [vmem:[%s5717_s1 + $0x274] sm:$0xf0]  ;;  %v3645_v57 = vld [vmem:[%s5717_s1 + $0x74] sm:$0xf]  ;;  %s4070_s13 = smov 68  }
  0x1f   :  { %731 = vmatpush.bf16.msra.mxu3 %v3114_v32  ;;  %vm120_vm2 = vsmask.f32 6400  ;;  %v89_v50 = vshll.u32 %v4350_v42, 16  ;;  %v93_v51 = vshrl.u32 %v4350_v42, 16  ;;  %v4362_v52 = vsel %vm72_vm0, %v79_v43, %v4352_v44  ;;  %v2971_v59 = vld [vmem:[%s5717_s1 + $0x78] sm:$0xf0] }
  0x20   :  { %645 = vmatpush.bf16.msra.mxu0 %v2914_v39  ;;  %v4367_v53 = vsel %vm108_vm1, %v109_v45, %v110_v46  ;;  %v4371_v54 = vsel %vm120_vm2, %v123_v48, %v4356_v49  ;;  %v3226_v58 = vor.u32 %v3710_v56, %v3225_v55  ;;  %v3661_v60 = vld [vmem:[%s5717_s1 + $0xf4] sm:$0xf]  ;;  %v3035_v61 = vld [vmem:[%s5717_s1 + $0xf8] sm:$0xf0]  ;;  %v2974_v0 = vor.u32 %v3645_v57, %v2971_v59  ;;  %v3217_v5 = vld [vmem:[%s5717_s1 + $0x260] sm:$0xf] }
  0x21   :  { %674 = vmatpush.bf16.msra.mxu1 %v2978_v40  ;;  %v128_v62 = vrot.slane %v93_v51, 1  ;;  %v129_v63 = vrot.slane %v89_v50, 2  ;;  %v3038_v1 = vor.u32 %v3661_v60, %v3035_v61  ;;  %v3677_v2 = vld [vmem:[%s5717_s1 + $0x174] sm:$0xf]  ;;  %v3099_v3 = vld [vmem:[%s5717_s1 + $0x178] sm:$0xf0] }
  0x22   :  { %703 = vmatpush.bf16.msra.mxu2 %v3042_v41  ;;  %v3102_v4 = vor.u32 %v3677_v2, %v3099_v3  ;;  %v3708_v6 = vld [vmem:[%s5717_s1 + $0x264] sm:$0xf0]  ;;  %v3643_v7 = vld [vmem:[%s5717_s1 + $0x64] sm:$0xf]  ;;  %v2963_v9 = vld [vmem:[%s5717_s1 + $0x68] sm:$0xf0]  ;;  %v87_v41 = vor.u32 %v85_v31, %v4352_v44 }
  0x23   :  { %732 = vmatpush.bf16.msra.mxu3 %v3106_v47  ;;  %646 = vmatmul.bf16.vlgmr.msra.gmra.mxu0 %v4310_v16  ;;  %v3218_v8 = vor.u32 %v3708_v6, %v3217_v5  ;;  %v3659_v10 = vld [vmem:[%s5717_s1 + $0xe4] sm:$0xf]  ;;  %v3027_v11 = vld [vmem:[%s5717_s1 + $0xe8] sm:$0xf0]  ;;  %v2966_v12 = vor.u32 %v3643_v7, %v2963_v9  ;;  %v3209_v18 = vld [vmem:[%s5717_s1 + $0x250] sm:$0xf]  ;;  %v4490_v48 = vor.u32 %v129_v63, %v128_v62 }
  0x24   :  { %675 = vmatmul.bf16.vlgmr.msra.gmra.mxu1 %v4362_v52  ;;  %754 = vmatpush.bf16.msrb.mxu0 %v3226_v58  ;;  %v3030_v13 = vor.u32 %v3659_v10, %v3027_v11  ;;  %v3675_v14 = vld [vmem:[%s5717_s1 + $0x164] sm:$0xf]  ;;  %v3091_v15 = vld [vmem:[%s5717_s1 + $0x168] sm:$0xf0]  ;;  %v3706_v20 = vld [vmem:[%s5717_s1 + $0x254] sm:$0xf0] }
  0x25   :  { %704 = vmatmul.bf16.vlgmr.msra.gmra.mxu2 %v4367_v53  ;;  %783 = vmatpush.bf16.msrb.mxu1 %v2974_v0  ;;  %v3094_v19 = vor.u32 %v3675_v14, %v3091_v15  ;;  %v3641_v21 = vld [vmem:[%s5717_s1 + $0x54] sm:$0xf]  ;;  %v2955_v22 = vld [vmem:[%s5717_s1 + $0x58] sm:$0xf0]  ;;  %v3210_v23 = vor.u32 %v3706_v20, %v3209_v18  ;;  %v3201_v32 = vld [vmem:[%s5717_s1 + $0x240] sm:$0xf]  ;;  %v4508_v59 = vsel %vm120_vm2, %v4356_v49, %v4490_v48 }
  0x26   :  { %733 = vmatmul.bf16.vlgmr.msra.gmra.mxu3 %v4371_v54  ;;  %812 = vmatpush.bf16.msrb.mxu2 %v3038_v1  ;;  %v3657_v24 = vld [vmem:[%s5717_s1 + $0xd4] sm:$0xf]  ;;  %v3019_v25 = vld [vmem:[%s5717_s1 + $0xd8] sm:$0xf0]  ;;  %v2958_v28 = vor.u32 %v3641_v21, %v2955_v22  ;;  %v3704_v33 = vld [vmem:[%s5717_s1 + $0x244] sm:$0xf0] }
  0x27   :  { %841 = vmatpush.bf16.msrb.mxu3 %v3102_v4  ;;  %v3673_v26 = vld [vmem:[%s5717_s1 + $0x154] sm:$0xf]  ;;  %v3022_v29 = vor.u32 %v3657_v24, %v3019_v25  ;;  %v3083_v30 = vld [vmem:[%s5717_s1 + $0x158] sm:$0xf0]  ;;  %v3639_v35 = vld [vmem:[%s5717_s1 + $0x44] sm:$0xf]  ;;  %v3202_v47 = vor.u32 %v3704_v33, %v3201_v32 }
  0x28   :  { %755 = vmatpush.bf16.msrb.mxu0 %v3218_v8  ;;  %v3086_v34 = vor.u32 %v3673_v26, %v3083_v30  ;;  %v2947_v36 = vld [vmem:[%s5717_s1 + $0x48] sm:$0xf0]  ;;  %v3655_v37 = vld [vmem:[%s5717_s1 + $0xc4] sm:$0xf]  ;;  %v4487_v43 = vrot.slane %v89_v50, 1  ;;  %v112_v45 = vrot.slane %v4350_v42, 1 }
  0x29   :  { %784 = vmatpush.bf16.msrb.mxu1 %v2966_v12  ;;  %v3011_v38 = vld [vmem:[%s5717_s1 + $0xc8] sm:$0xf0]  ;;  %v3671_v39 = vld [vmem:[%s5717_s1 + $0x144] sm:$0xf]  ;;  %v2950_v55 = vor.u32 %v3639_v35, %v2947_v36  ;;  %v97_v58 = vshll.u32 %v4453_v27, 16  ;;  %v101_v31 = vshrl.u32 %v4453_v27, 16 }
  0x2a   :  { %813 = vmatpush.bf16.msrb.mxu2 %v3030_v13  ;;  %v3075_v40 = vld [vmem:[%s5717_s1 + $0x148] sm:$0xf0]  ;;  %v3014_v56 = vor.u32 %v3655_v37, %v3011_v38  ;;  %v4496_v44 = vsel %vm72_vm0, %v87_v41, %v4487_v43  ;;  %v4503_v50 = vsel %vm108_vm1, %v110_v46, %v112_v45  ;;  %v3193_v60 = vld [vmem:[%s5717_s1 + $0x230] sm:$0xf]  ;;  %v3702_v61 = vld [vmem:[%s5717_s1 + $0x234] sm:$0xf0] }
  0x2b   :  { %842 = vmatpush.bf16.msrb.mxu3 %v3094_v19  ;;  %v3078_v57 = vor.u32 %v3671_v39, %v3075_v40  ;;  %v3637_v46 = vld [vmem:[%s5717_s1 + $0x34] sm:$0xf]  ;;  %v3194_v62 = vor.u32 %v3702_v61, %v3193_v60  ;;  %v2939_v49 = vld [vmem:[%s5717_s1 + $0x38] sm:$0xf0]  ;;  %v132_v1 = vrot.slane %v101_v31, 1  ;;  %v133_v2 = vrot.slane %v97_v58, 2 }
  0x2c   :  { %756 = vmatpush.bf16.msrb.mxu0 %v3210_v23  ;;  %v3653_v63 = vld [vmem:[%s5717_s1 + $0xb4] sm:$0xf]  ;;  %v3003_v0 = vld [vmem:[%s5717_s1 + $0xb8] sm:$0xf0]  ;;  %v2942_v3 = vor.u32 %v3637_v46, %v2939_v49  ;;  %v3185_v8 = vld [vmem:[%s5717_s1 + $0x220] sm:$0xf] }
  0x2d   :  { %785 = vmatpush.bf16.msrb.mxu1 %v2958_v28  ;;  %v3006_v4 = vor.u32 %v3653_v63, %v3003_v0  ;;  %v3669_v5 = vld [vmem:[%s5717_s1 + $0x134] sm:$0xf]  ;;  %v3067_v6 = vld [vmem:[%s5717_s1 + $0x138] sm:$0xf0]  ;;  %v3700_v9 = vld [vmem:[%s5717_s1 + $0x224] sm:$0xf0]  ;;  %v4622_v46 = vor.u32 %v133_v2, %v132_v1 }
  0x2e   :  { %814 = vmatpush.bf16.msrb.mxu2 %v3022_v29  ;;  %v3070_v7 = vor.u32 %v3669_v5, %v3067_v6  ;;  %v3635_v10 = vld [vmem:[%s5717_s1 + $0x24] sm:$0xf]  ;;  %v3186_v11 = vor.u32 %v3700_v9, %v3185_v8  ;;  %v2931_v12 = vld [vmem:[%s5717_s1 + $0x28] sm:$0xf0]  ;;  %v3177_v21 = vld [vmem:[%s5717_s1 + $0x210] sm:$0xf] }
  0x2f   :  { %843 = vmatpush.bf16.msrb.mxu3 %v3086_v34  ;;  %v3651_v13 = vld [vmem:[%s5717_s1 + $0xa4] sm:$0xf]  ;;  %v2995_v14 = vld [vmem:[%s5717_s1 + $0xa8] sm:$0xf0]  ;;  %v2934_v15 = vor.u32 %v3635_v10, %v2931_v12  ;;  %v3698_v23 = vld [vmem:[%s5717_s1 + $0x214] sm:$0xf0] }
  0x30   :  { %757 = vmatpush.bf16.msrb.mxu0 %v3202_v47  ;;  %v2998_v18 = vor.u32 %v3651_v13, %v2995_v14  ;;  %v3667_v19 = vld [vmem:[%s5717_s1 + $0x124] sm:$0xf]  ;;  %v3059_v20 = vld [vmem:[%s5717_s1 + $0x128] sm:$0xf0]  ;;  %v3633_v24 = vld [vmem:[%s5717_s1 + $0x14] sm:$0xf]  ;;  %v3178_v26 = vor.u32 %v3698_v23, %v3177_v21 }
  0x31   :  { %786 = vmatpush.bf16.msrb.mxu1 %v2950_v55  ;;  %v3062_v22 = vor.u32 %v3667_v19, %v3059_v20  ;;  %v2923_v25 = vld [vmem:[%s5717_s1 + $0x18] sm:$0xf0]  ;;  %v3649_v28 = vld [vmem:[%s5717_s1 + $0x94] sm:$0xf]  ;;  %v3169_v35 = vld [vmem:[%s5717_s1 + $0x200] sm:$0xf] }
  0x32   :  { %815 = vmatpush.bf16.msrb.mxu2 %v3014_v56  ;;  %v2987_v29 = vld [vmem:[%s5717_s1 + $0x98] sm:$0xf0]  ;;  %v3665_v30 = vld [vmem:[%s5717_s1 + $0x114] sm:$0xf]  ;;  %v2926_v32 = vor.u32 %v3633_v24, %v2923_v25  ;;  %v3696_v36 = vld [vmem:[%s5717_s1 + $0x204] sm:$0xf0]  ;;  %v95_v56 = vor.u32 %v93_v51, %v4487_v43  ;;  %v4636_v43 = vsel %vm120_vm2, %v4490_v48, %v4622_v46 }
  0x33   :  { %651 = vmatmul.bf16.gmra.mxu0 %v4315_v17  ;;  %844 = vmatpush.bf16.msrb.mxu3 %v3078_v57  ;;  %v2990_v33 = vor.u32 %v3649_v28, %v2987_v29  ;;  %v3051_v34 = vld [vmem:[%s5717_s1 + $0x118] sm:$0xf0]  ;;  %v3631_v38 = vld [vmem:[%s5717_s1 + $0x4] sm:$0xf]  ;;  %v2915_v39 = vld [vmem:[%s5717_s1 + $0x8] sm:$0xf0]  ;;  %v3170_v61 = vor.u32 %v3696_v36, %v3169_v35 }
  0x34   :  { %680 = vmatmul.bf16.gmra.mxu1 %v4496_v44  ;;  %758 = vmatpush.bf16.msrb.mxu0 %v3194_v62  ;;  %v3054_v37 = vor.u32 %v3665_v30, %v3051_v34  ;;  %v3647_v40 = vld [vmem:[%s5717_s1 + $0x84] sm:$0xf]  ;;  %v2979_v41 = vld [vmem:[%s5717_s1 + $0x88] sm:$0xf0]  ;;  %v99_v57 = vrot.slane %v97_v58, 1  ;;  %v4620_v60 = vrot.slane %v4453_v27, 1  ;;  %v2918_v62 = vor.u32 %v3631_v38, %v2915_v39 }
  0x35   :  { %709 = vmatmul.bf16.gmra.mxu2 %v4503_v50  ;;  %787 = vmatpush.bf16.msrb.mxu1 %v2942_v3  ;;  %v3663_v47 = vld [vmem:[%s5717_s1 + $0x104] sm:$0xf]  ;;  %v3043_v55 = vld [vmem:[%s5717_s1 + $0x108] sm:$0xf0]  ;;  %v2982_v49 = vor.u32 %v3647_v40, %v2979_v41  ;;  %v141_v48 = vrot.slane %v4310_v16, 2  ;;  %v142_v58 = vrot.slane %v4315_v17, 2 }
  0x36   :  { %738 = vmatmul.bf16.gmra.mxu3 %v4508_v59  ;;  %816 = vmatpush.bf16.msrb.mxu2 %v3006_v4  ;;  %v3046_v63 = vor.u32 %v3663_v47, %v3043_v55  ;;  %v4625_v0 = vsel %vm72_vm0, %v95_v56, %v99_v57  ;;  %v4631_v51 = vsel %vm108_vm1, %v112_v45, %v4620_v60  ;;  %vm140_vm3 = vcmask 1045504   ;;  %v3163_v2 = vld [vmem:[%s5717_s1 + $0x1f8] sm:$0xf0]  ;;  %v3709_v3 = vld [vmem:[%s5717_s1 + $0x274] sm:$0xf]  ;;  %s4071_s14 = smov 102  }
  0x37   :  { %845 = vmatpush.bf16.msrb.mxu3 %v3070_v7  ;;  %v4644_v45 = vor.u32 %v101_v31, %v99_v57  ;;  %v4653_v1 = vsel %vm140_vm3, %v141_v48, %v142_v58  ;;  %v3693_v31 = vld [vmem:[%s5717_s1 + $0x1f4] sm:$0xf]  ;;  %v3227_v5 = vld [vmem:[%s5717_s1 + $0x278] sm:$0xf0]  ;;  %v3691_v7 = vld [vmem:[%s5717_s1 + $0x1e4] sm:$0xf] }
  0x38   :  { %759 = vmatpush.bf16.msrb.mxu0 %v3186_v11  ;;  %v3166_v4 = vor.u32 %v3693_v31, %v3163_v2  ;;  %v3230_v6 = vor.u32 %v3709_v3, %v3227_v5  ;;  %v3155_v8 = vld [vmem:[%s5717_s1 + $0x1e8] sm:$0xf0]  ;;  %v3707_v9 = vld [vmem:[%s5717_s1 + $0x264] sm:$0xf]  ;;  %v3147_v10 = vld [vmem:[%s5717_s1 + $0x1d8] sm:$0xf0] }
  0x39   :  { %788 = vmatpush.bf16.msrb.mxu1 %v2934_v15  ;;  %v3705_v12 = vld [vmem:[%s5717_s1 + $0x254] sm:$0xf]  ;;  %v3211_v13 = vld [vmem:[%s5717_s1 + $0x258] sm:$0xf0]  ;;  %v3139_v19 = vld [vmem:[%s5717_s1 + $0x1c8] sm:$0xf0] }
  0x3a   :  { %817 = vmatpush.bf16.msrb.mxu2 %v2998_v18  ;;  %v3214_v15 = vor.u32 %v3705_v12, %v3211_v13  ;;  %v3687_v18 = vld [vmem:[%s5717_s1 + $0x1c4] sm:$0xf]  ;;  %v3203_v21 = vld [vmem:[%s5717_s1 + $0x248] sm:$0xf0]  ;;  %v3131_v28 = vld [vmem:[%s5717_s1 + $0x1b8] sm:$0xf0] }
  0x3b   :  { %846 = vmatpush.bf16.msrb.mxu3 %v3062_v22  ;;  %v3703_v20 = vld [vmem:[%s5717_s1 + $0x244] sm:$0xf]  ;;  %v144_v22 = vrot.slane %v4350_v42, 2  ;;  %v3142_v23 = vor.u32 %v3687_v18, %v3139_v19  ;;  %v3701_v29 = vld [vmem:[%s5717_s1 + $0x234] sm:$0xf]  ;;  %v4752_v55 = vrot.slane %v4453_v27, 2 }
  0x3c   :  { %760 = vmatpush.bf16.msrb.mxu0 %v3178_v26  ;;  %v3206_v24 = vor.u32 %v3703_v20, %v3203_v21  ;;  %v3685_v26 = vld [vmem:[%s5717_s1 + $0x1b4] sm:$0xf]  ;;  %v3683_v34 = vld [vmem:[%s5717_s1 + $0x1a4] sm:$0xf]  ;;  %v3123_v35 = vld [vmem:[%s5717_s1 + $0x1a8] sm:$0xf0] }
  0x3d   :  { %789 = vmatpush.bf16.msrb.mxu1 %v2926_v32  ;;  %v4709_v25 = vsel %vm140_vm3, %v142_v58, %v144_v22  ;;  %v3134_v30 = vor.u32 %v3685_v26, %v3131_v28  ;;  %v3195_v32 = vld [vmem:[%s5717_s1 + $0x238] sm:$0xf0]  ;;  %v3699_v36 = vld [vmem:[%s5717_s1 + $0x224] sm:$0xf]  ;;  %v3697_v39 = vld [vmem:[%s5717_s1 + $0x214] sm:$0xf] }
  0x3e   :  { %818 = vmatpush.bf16.msrb.mxu2 %v2990_v33  ;;  %v3198_v33 = vor.u32 %v3701_v29, %v3195_v32  ;;  %v3179_v40 = vld [vmem:[%s5717_s1 + $0x218] sm:$0xf0]  ;;  %v3679_v56 = vld [vmem:[%s5717_s1 + $0x184] sm:$0xf]  ;;  %v3107_v57 = vld [vmem:[%s5717_s1 + $0x188] sm:$0xf0] }
  0x3f   :  { %847 = vmatpush.bf16.msrb.mxu3 %v3054_v37  ;;  %v3115_v37 = vld [vmem:[%s5717_s1 + $0x198] sm:$0xf0]  ;;  %v3182_v47 = vor.u32 %v3697_v39, %v3179_v40  ;;  %v4778_v58 = vld [vmem:[%s5718_s2] sm:$0x3]  ;;  %s4068_s2 = smov 122   ;;  %vm1071_vm4 = vcmask 998400  }
  0x40   :  { %761 = vmatpush.bf16.msrb.mxu0 %v3170_v61  ;;  %v3695_v61 = vld [vmem:[%s5717_s1 + $0x204] sm:$0xf]  ;;  %v4781_v31 = vperm.slane %v4778_v58, 0  ;;  %vm1203_vm5 = vcmask 1043456   ;;  %vm1282_vm6 = vcmask 1041408   ;;  %vm1181_vm7 = vcmask 277504  }
  0x41   :  { %790 = vmatpush.bf16.msrb.mxu1 %v2918_v62  ;;  %v3110_v62 = vor.u32 %v3679_v56, %v3107_v57  ;;  %vm1258_vm8 = vcmask 556032   ;;  %vm1900_vm9 = vcmask 1044480   ;;  %vm1341_vm10 = vcmask 834560   ;;  %s4075_s25 = smov 108   ;;  %s4078_s30 = smov [#allocation2]  }
  0x42   :  { %819 = vmatpush.bf16.msrb.mxu2 %v2982_v49  ;;  %v3171_v49 = vld [vmem:[%s5717_s1 + $0x208] sm:$0xf0]  ;;  %vm1398_vm11 = vcmask 64512   ;;  %vm1887_vm12 = vcmask 343040   ;;  %vm2260_vm13 = vcmask 719872   ;;  %vm2254_vm14 = vcmask 883712  }
  0x43   :  { %656 = vmatmul.bf16.gmra.mxu0 %v4350_v42  ;;  %848 = vmatpush.bf16.msrb.mxu3 %v3046_v63  ;;  %v147_v63 = vsel %vm140_vm3, %v144_v22, %v4752_v55  ;;  %v3174_v48 = vor.u32 %v3695_v61, %v3171_v49  ;;  %vm2271_vm15 = vcmask 392192   ;;  %vm2567_vm0 = vcmask 228352   ;;  %s2886_s15 = sshll.u32 %s5727_s11, 4  ;;  %s2887_s15 = int_to_ptr.hbm [resolvable:$true] %s2886_s15 }
  0x44   :  { %685 = vmatmul.bf16.gmra.mxu1 %v4625_v0  ;;  %870 = vmatpush.bf16.msra.mxu0 %v3166_v4 }
  0x45   :  { %714 = vmatmul.bf16.gmra.mxu2 %v4631_v51  ;;  %899 = vmatpush.bf16.msra.mxu1 %v3230_v6 }
  0x46   :  { %743 = vmatmul.bf16.gmra.mxu3 %v4636_v43 }
  0x53   :  { %661 = vmatmul.bf16.gmra.mxu0 %v4453_v27 }
  0x54   :  { %690 = vmatmul.bf16.gmra.mxu1 %v4644_v45 }
  0x55   :  { %719 = vmatmul.bf16.gmra.mxu2 %v4620_v60 }
  0x56   :  { %748 = vmatmul.bf16.gmra.mxu3 %v4622_v46 }
  0x63   :  { %762 = vmatmul.bf16.vlgmr.msrb.gmra.mxu0 %v4653_v1 }
  0x64   :  { %791 = vmatmul.bf16.vlgmr.msrb.gmra.mxu1 %v4310_v16  ;;  %v3158_v16 = vor.u32 %v3691_v7, %v3155_v8 }
  0x65   :  { %820 = vmatmul.bf16.vlgmr.msrb.gmra.mxu2 %v4362_v52  ;;  %v3219_v52 = vld [vmem:[%s5717_s1 + $0x268] sm:$0xf0] }
  0x66   :  { %849 = vmatmul.bf16.vlgmr.msrb.gmra.mxu3 %v4367_v53  ;;  %v3689_v53 = vld [vmem:[%s5717_s1 + $0x1d4] sm:$0xf]  ;;  %v3222_v11 = vor.u32 %v3707_v9, %v3219_v52  ;;  %871 = vmatpush.bf16.msra.mxu0 %v3158_v16 }
  0x67   :  { %v3150_v14 = vor.u32 %v3689_v53, %v3147_v10 }
  0x68   :  { %900 = vmatpush.bf16.msra.mxu1 %v3222_v11 }
  0x6a   :  { %872 = vmatpush.bf16.msra.mxu0 %v3150_v14 }
  0x6c   :  { %901 = vmatpush.bf16.msra.mxu1 %v3214_v15 }
  0x6e   :  { %873 = vmatpush.bf16.msra.mxu0 %v3142_v23 }
  0x70   :  { %902 = vmatpush.bf16.msra.mxu1 %v3206_v24 }
  0x72   :  { %874 = vmatpush.bf16.msra.mxu0 %v3134_v30 }
  0x73   :  { %767 = vmatmul.bf16.gmra.mxu0 %v4709_v25 }
  0x74   :  { %796 = vmatmul.bf16.gmra.mxu1 %v4315_v17  ;;  %v3126_v17 = vor.u32 %v3683_v34, %v3123_v35 }
  0x75   :  { %825 = vmatmul.bf16.gmra.mxu2 %v4496_v44  ;;  %903 = vmatpush.bf16.msra.mxu1 %v3198_v33  ;;  %v3187_v44 = vld [vmem:[%s5717_s1 + $0x228] sm:$0xf0] }
  0x76   :  { %854 = vmatmul.bf16.gmra.mxu3 %v4503_v50  ;;  %v3681_v50 = vld [vmem:[%s5717_s1 + $0x194] sm:$0xf]  ;;  %v3190_v38 = vor.u32 %v3699_v36, %v3187_v44  ;;  %875 = vmatpush.bf16.msra.mxu0 %v3126_v17  ;;  %s4072_s1 = smov 8  }
  0x77   :  { %v3118_v41 = vor.u32 %v3681_v50, %v3115_v37 }
  0x79   :  { %904 = vmatpush.bf16.msra.mxu1 %v3190_v38 }
  0x7a   :  { %876 = vmatpush.bf16.msra.mxu0 %v3118_v41 }
  0x7d   :  { %905 = vmatpush.bf16.msra.mxu1 %v3182_v47 }
  0x7e   :  { %877 = vmatpush.bf16.msra.mxu0 %v3110_v62 }
  0x81   :  { %906 = vmatpush.bf16.msra.mxu1 %v3174_v48 }
  0x83   :  { %772 = vmatmul.bf16.gmra.mxu0 %v147_v63 }
  0x84   :  { %801 = vmatmul.bf16.gmra.mxu1 %v4350_v42 }
  0x85   :  { %830 = vmatmul.bf16.gmra.mxu2 %v4625_v0 }
  0x86   :  { %859 = vmatmul.bf16.gmra.mxu3 %v4631_v51 }
  0x93   :  { %777 = vmatmul.bf16.gmra.mxu0 %v4752_v55 }
  0x94   :  { %806 = vmatmul.bf16.gmra.mxu1 %v4453_v27 }
  0x95   :  { %835 = vmatmul.bf16.gmra.mxu2 %v4644_v45 }
  0x96   :  { %864 = vmatmul.bf16.gmra.mxu3 %v4620_v60 }
  0xa0   :  { %v647_v42 = vpop.f32.mrf.mxu0 }
  0xa1   :  { %v648_v0 = vadd.f32 %v647_v42, %v4781_v31  ;;  %v676_v51 = vpop.f32.mrf.mxu1 }
  0xa3   :  { %v677_v2 = vadd.f32 %v676_v51, %v648_v0  ;;  %878 = vmatmul.bf16.vlgmr.msra.gmra.mxu0 %v4371_v54 }
  0xa4   :  { %907 = vmatmul.bf16.vlgmr.msra.gmra.mxu1 %v4653_v1 }
  0xa8   :  { %v705_v27 = vpop.f32.mrf.mxu2  ;;  %v4786_v60 = vpop.f32.mrf.mxu0 }
  0xa9   :  { %v706_v45 = vadd.f32 %v705_v27, %v677_v2  ;;  %v734_v3 = vpop.f32.mrf.mxu3  ;;  %v4788_v4 = vpop.f32.mrf.mxu1 }
  0xab   :  { %v735_v5 = vadd.f32 %v734_v3, %v706_v45 }
  0xb0   :  { %v4790_v6 = vpop.f32.mrf.mxu2  ;;  %v652_v7 = vpop.f32.mrf.mxu0 }
  0xb1   :  { %v4792_v8 = vpop.f32.mrf.mxu3  ;;  %v653_v9 = vadd.f32 %v652_v7, %v4781_v31  ;;  %v681_v16 = vpop.f32.mrf.mxu1 }
  0xb3   :  { %v682_v52 = vadd.f32 %v681_v16, %v653_v9  ;;  %883 = vmatmul.bf16.gmra.mxu0 %v4508_v59  ;;  %v650_v16 = vadd.f32 %v4786_v60, %v4781_v31 }
  0xb4   :  { %912 = vmatmul.bf16.gmra.mxu1 %v4709_v25 }
  0xb8   :  { %v710_v54 = vpop.f32.mrf.mxu2  ;;  %v4797_v53 = vpop.f32.mrf.mxu0 }
  0xb9   :  { %v711_v1 = vadd.f32 %v710_v54, %v682_v52  ;;  %v739_v10 = vpop.f32.mrf.mxu3  ;;  %v4799_v11 = vpop.f32.mrf.mxu1  ;;  %v4842_v54 = vperm.slane %v4778_v58, 1 }
  0xbb   :  { %v740_v12 = vadd.f32 %v739_v10, %v711_v1 }
  0xc0   :  { %v4801_v13 = vpop.f32.mrf.mxu2  ;;  %v657_v14 = vpop.f32.mrf.mxu0 }
  0xc1   :  { %v4803_v15 = vpop.f32.mrf.mxu3  ;;  %v658_v18 = vadd.f32 %v657_v14, %v4781_v31  ;;  %v686_v19 = vpop.f32.mrf.mxu1 }
  0xc3   :  { %v687_v20 = vadd.f32 %v686_v19, %v658_v18  ;;  %888 = vmatmul.bf16.gmra.mxu0 %v4636_v43  ;;  %v679_v18 = vadd.f32 %v4788_v4, %v650_v16 }
  0xc4   :  { %917 = vmatmul.bf16.gmra.mxu1 %v147_v63 }
  0xc8   :  { %v715_v59 = vpop.f32.mrf.mxu2  ;;  %v4807_v22 = vpop.f32.mrf.mxu0 }
  0xc9   :  { %v716_v21 = vadd.f32 %v715_v59, %v687_v20  ;;  %v744_v23 = vpop.f32.mrf.mxu3  ;;  %v4809_v24 = vpop.f32.mrf.mxu1  ;;  %v708_v59 = vadd.f32 %v4790_v6, %v679_v18  ;;  %v655_v6 = vadd.f32 %v4797_v53, %v4781_v31 }
  0xcb   :  { %v745_v25 = vadd.f32 %v744_v23, %v716_v21  ;;  %v737_v58 = vadd.f32 %v4792_v8, %v708_v59 }
  0xd0   :  { %v4811_v26 = vpop.f32.mrf.mxu2  ;;  %v662_v28 = vpop.f32.mrf.mxu0 }
  0xd1   :  { %v4813_v29 = vpop.f32.mrf.mxu3  ;;  %v663_v30 = vadd.f32 %v662_v28, %v4781_v31  ;;  %v691_v32 = vpop.f32.mrf.mxu1 }
  0xd3   :  { %v692_v33 = vadd.f32 %v691_v32, %v663_v30  ;;  %893 = vmatmul.bf16.gmra.mxu0 %v4622_v46 }
  0xd4   :  { %922 = vmatmul.bf16.gmra.mxu1 %v4752_v55 }
  0xd8   :  { %v720_v43 = vpop.f32.mrf.mxu2  ;;  %v664_v35 = vpop.f32.mrf.mxu0 }
  0xd9   :  { %v721_v34 = vadd.f32 %v720_v43, %v692_v33  ;;  %v749_v36 = vpop.f32.mrf.mxu3  ;;  %v693_v17 = vpop.f32.mrf.mxu1  ;;  %v665_v51 = vadd.f32 %v664_v35, %v4781_v31 }
  0xdb   :  { %v750_v44 = vadd.f32 %v749_v36, %v721_v34  ;;  %v694_v45 = vadd.f32 %v693_v17, %v665_v51 }
  0xe0   :  { %v763_v50 = vpop.f32.mrf.mxu0  ;;  %v722_v55 = vpop.f32.mrf.mxu2 }
  0xe1   :  { %v4818_v37 = vadd.f32 %v763_v50, %v735_v5  ;;  %v792_v38 = vpop.f32.mrf.mxu1  ;;  %v751_v63 = vpop.f32.mrf.mxu3  ;;  %v723_v7 = vadd.f32 %v722_v55, %v694_v45 }
  0xe2   :  { %v793_v19 = vadd.f32 %v792_v38, %v4842_v54 }
  0xe3   :  { %v752_v52 = vadd.f32 %v751_v63, %v723_v7  ;;  %v928_v50 = vmax.f32 %v4818_v37, 0.0 }
  0xe8   :  { %v765_v39 = vpop.f32.mrf.mxu0  ;;  %v821_v0 = vpop.f32.mrf.mxu2 }
  0xe9   :  { %v794_v40 = vpop.f32.mrf.mxu1  ;;  %v850_v2 = vpop.f32.mrf.mxu3  ;;  %v822_v21 = vadd.f32 %v821_v0, %v793_v19  ;;  %v766_v4 = vadd.f32 %v765_v39, %v737_v58  ;;  %v684_v39 = vadd.f32 %v4799_v11, %v655_v6 }
  0xea   :  { %v795_v30 = vadd.f32 %v794_v40, %v4842_v54 }
  0xeb   :  { %v851_v32 = vadd.f32 %v850_v2, %v822_v21  ;;  %v930_v36 = vmax.f32 %v766_v4, 0.0  ;;  %v961_v2 = vrot.slane %v928_v50, 1  ;;  %v713_v53 = vadd.f32 %v4801_v13, %v684_v39 }
  0xf0   :  { %v768_v41 = vpop.f32.mrf.mxu0  ;;  %v823_v9 = vpop.f32.mrf.mxu2 }
  0xf1   :  { %v4820_v47 = vadd.f32 %v768_v41, %v740_v12  ;;  %v797_v56 = vpop.f32.mrf.mxu1  ;;  %v852_v1 = vpop.f32.mrf.mxu3  ;;  %v824_v34 = vadd.f32 %v823_v9, %v795_v30 }
  0xf2   :  { %v798_v8 = vadd.f32 %v797_v56, %v4842_v54 }
  0xf3   :  { %v853_v17 = vadd.f32 %v852_v1, %v824_v34  ;;  %v932_v37 = vmax.f32 %v4820_v47, 0.0  ;;  %v742_v1 = vadd.f32 %v4803_v15, %v713_v53 }
  0xf5   :  { %v967_v59 = vrot.slane %v932_v37, 1 }
  0xf8   :  { %v4822_v57 = vpop.f32.mrf.mxu0  ;;  %v826_v60 = vpop.f32.mrf.mxu2 }
  0xf9   :  { %v4824_v46 = vpop.f32.mrf.mxu1  ;;  %v855_v43 = vpop.f32.mrf.mxu3  ;;  %v827_v63 = vadd.f32 %v826_v60, %v798_v8  ;;  %v4873_v47 = vadd.f32 %v4822_v57, %v742_v1 }
  0xfa   :  { %v800_v11 = vadd.f32 %v4824_v46, %v4842_v54  ;;  %v660_v46 = vadd.f32 %v4807_v22, %v4781_v31 }
  0xfb   :  { %v856_v9 = vadd.f32 %v855_v43, %v827_v63  ;;  %v934_v30 = vmax.f32 %v4873_v47, 0.0 }
  0xfc   :  { %v689_v22 = vadd.f32 %v4809_v24, %v660_v46 }
 0x100   :  { %v773_v61 = vpop.f32.mrf.mxu0  ;;  %v828_v38 = vpop.f32.mrf.mxu2 }
 0x101   :  { %v4826_v62 = vadd.f32 %v773_v61, %v745_v25  ;;  %v4828_v49 = vpop.f32.mrf.mxu1  ;;  %v962_v61 = vrot.slane %v930_v36, 1  ;;  %v829_v21 = vadd.f32 %v828_v38, %v800_v11 }
 0x102   :  { %v803_v43 = vadd.f32 %v4828_v49, %v4842_v54 }
 0x103   :  { %v963_v7 = vsel %vm108_vm1, %v961_v2, %v962_v61  ;;  %v968_v57 = vsel %vm108_vm1, %v962_v61, %v967_v59 }
 0x104   :  { %v4868_v13 = vmax.f32 %v928_v50, %v963_v7 }
 0x108   :  { %v4830_v48 = vpop.f32.mrf.mxu0  ;;  %v831_v19 = vpop.f32.mrf.mxu2 }
 0x109   :  { %v4832_v42 = vpop.f32.mrf.mxu1  ;;  %v832_v50 = vadd.f32 %v831_v19, %v803_v43 }
 0x110   :  { %v778_v27 = vpop.f32.mrf.mxu0 }
 0x111   :  { %v4835_v3 = vadd.f32 %v778_v27, %v750_v44  ;;  %v4837_v5 = vpop.f32.mrf.mxu1  ;;  %v857_v27 = vpop.f32.mrf.mxu3 }
 0x118   :  { %v780_v10 = vpop.f32.mrf.mxu0 }
 0x119   :  { %v781_v12 = vadd.f32 %v780_v10, %v752_v52  ;;  %v4844_v14 = vpop.f32.mrf.mxu1 }
 0x11b   :  { %v942_v20 = vmax.f32 %v781_v12, 0.0 }
 0x11d   :  { %v4849_v23 = vrot.slane %v942_v20, 1 }
 0x11f   :  { %v4852_v25 = vmax.f32 %v942_v20, %v4849_v23 }
 0x120   :  { %v879_v28 = vpop.f32.mrf.mxu0 }
 0x121   :  { %v908_v33 = vpop.f32.mrf.mxu1  ;;  %v880_v35 = vadd.f32 %v879_v28, %v851_v32  ;;  %v860_v28 = vpop.f32.mrf.mxu3  ;;  %v858_v32 = vadd.f32 %v857_v27, %v829_v21 }
 0x123   :  { %v909_v44 = vadd.f32 %v908_v33, %v880_v35 }
 0x125   :  { %v929_v0 = vmax.f32 %v909_v44, 0.0  ;;  %v971_v44 = vrot.slane %v934_v30, 1 }
 0x127   :  { %v964_v16 = vrot.slane %v929_v0, 1  ;;  %v972_v39 = vsel %vm108_vm1, %v967_v59, %v971_v44 }
 0x128   :  { %v881_v41 = vpop.f32.mrf.mxu0  ;;  %v4900_v53 = vmax.f32 %v932_v37, %v972_v39 }
 0x129   :  { %v882_v55 = vadd.f32 %v881_v41, %v853_v17  ;;  %v910_v40 = vpop.f32.mrf.mxu1  ;;  %v4885_v17 = vmax.f32 %v930_v36, %v968_v57  ;;  %v833_v41 = vpop.f32.mrf.mxu2  ;;  %v861_v36 = vadd.f32 %v860_v28, %v832_v50  ;;  %v940_v57 = vmax.f32 %v4835_v3, 0.0 }
 0x12a   :  { %v862_v63 = vpop.f32.mrf.mxu3 }
 0x12b   :  { %v911_v51 = vadd.f32 %v910_v40, %v882_v55  ;;  %v718_v55 = vadd.f32 %v4811_v26, %v689_v22  ;;  %v936_v40 = vmax.f32 %v4826_v62, 0.0  ;;  %v810_v22 = vadd.f32 %v4844_v14, %v4842_v54 }
 0x12d   :  { %v931_v45 = vmax.f32 %v911_v51, 0.0  ;;  %v805_v51 = vadd.f32 %v4832_v42, %v4842_v54  ;;  %v975_v62 = vrot.slane %v936_v40, 1  ;;  %v3718_v42 = vld [vmem:[%s5719_s3 + $0x38] sm:$0xff] }
 0x12e   :  { %1904 = vmatpush.bf16.msra.mxu2 %v3718_v42 }
 0x12f   :  { %v965_v56 = vrot.slane %v931_v45, 1 }
 0x130   :  { %v884_v52 = vpop.f32.mrf.mxu0 }
 0x131   :  { %v885_v10 = vadd.f32 %v884_v52, %v856_v9  ;;  %v913_v12 = vpop.f32.mrf.mxu1  ;;  %v966_v18 = vsel %vm108_vm1, %v964_v16, %v965_v56  ;;  %v834_v9 = vadd.f32 %v833_v41, %v805_v51  ;;  %v836_v52 = vpop.f32.mrf.mxu2 }
 0x132   :  { %v4870_v20 = vmax.f32 %v929_v0, %v966_v18  ;;  %v747_v0 = vadd.f32 %v4813_v29, %v718_v55  ;;  %v808_v18 = vadd.f32 %v4837_v5, %v4842_v54  ;;  %v865_v21 = vpop.f32.mrf.mxu3  ;;  %v3716_v5 = vld [vmem:[%s5719_s3 + $0x28] sm:$0xff] }
 0x133   :  { %v914_v60 = vadd.f32 %v913_v12, %v885_v10  ;;  %v863_v1 = vadd.f32 %v862_v63, %v834_v9  ;;  %v976_v10 = vsel %vm108_vm1, %v971_v44, %v975_v62 }
 0x134   :  { %v3818_v15 = vpack.i.bf16 %v4870_v20, %v4868_v13  ;;  %v776_v7 = vadd.f32 %v4830_v48, %v747_v0  ;;  %v3717_v48 = vld [vmem:[%s5719_s3 + $0x30] sm:$0xff]  ;;  %v837_v46 = vadd.f32 %v836_v52, %v808_v18 }
 0x135   :  { %v933_v58 = vmax.f32 %v914_v60, 0.0  ;;  %v4918_v60 = vmax.f32 %v934_v30, %v976_v10  ;;  %1905 = vmatpush.bf16.msra.mxu2 %v3717_v48  ;;  %v3711_v10 = vld [vmem:[%s5719_s3] sm:$0xff] }
 0x136   :  { %3819 = vrot.lane.b32.xlu0 %v3818_v15, %s4068_s2  ;;  %v938_v37 = vmax.f32 %v776_v7, 0.0  ;;  %v866_v30 = vadd.f32 %v865_v21, %v837_v46 }
 0x137   :  { %v969_v33 = vrot.slane %v933_v58, 1 }
 0x138   :  { %v886_v4 = vpop.f32.mrf.mxu0 }
 0x139   :  { %v887_v34 = vadd.f32 %v886_v4, %v858_v32  ;;  %v915_v35 = vpop.f32.mrf.mxu1  ;;  %v970_v6 = vsel %vm108_vm1, %v965_v56, %v969_v33  ;;  %1906 = vmatpush.bf16.msra.mxu2 %v3716_v5 }
 0x13a   :  { %v4887_v31 = vmax.f32 %v931_v45, %v970_v6  ;;  %v3715_v6 = vld [vmem:[%s5719_s3 + $0x20] sm:$0xff] }
 0x13b   :  { %v916_v38 = vadd.f32 %v915_v35, %v887_v34  ;;  %v838_v34 = vpop.f32.mrf.mxu2 }
 0x13c   :  { %v3823_v8 = vpack.i.bf16 %v4887_v31, %v4885_v17  ;;  %v839_v55 = vadd.f32 %v838_v34, %v810_v22 }
 0x13d   :  { %v935_v49 = vmax.f32 %v916_v38, 0.0  ;;  %1907 = vmatpush.bf16.msra.mxu2 %v3715_v6 }
 0x13e   :  { %3824 = vrot.lane.b32.xlu0 %v3823_v8, %s4068_s2  ;;  %v983_v8 = vrot.slane %v940_v57, 1 }
 0x13f   :  { %v973_v61 = vrot.slane %v935_v49, 1 }
 0x140   :  { %v889_v24 = vpop.f32.mrf.mxu0 }
 0x141   :  { %v890_v2 = vadd.f32 %v889_v24, %v861_v36  ;;  %v918_v27 = vpop.f32.mrf.mxu1  ;;  %v974_v26 = vsel %vm108_vm1, %v969_v33, %v973_v61  ;;  %v867_v36 = vpop.f32.mrf.mxu3 }
 0x142   :  { %v4902_v45 = vmax.f32 %v933_v58, %v974_v26  ;;  %v979_v58 = vrot.slane %v938_v37, 1  ;;  %v868_v54 = vadd.f32 %v867_v36, %v839_v55 }
 0x143   :  { %v919_v16 = vadd.f32 %v918_v27, %v890_v2 }
 0x144   :  { %v3828_v56 = vpack.i.bf16 %v4902_v45, %v4900_v53  ;;  %v980_v43 = vsel %vm108_vm1, %v975_v62, %v979_v58  ;;  %v984_v63 = vsel %vm108_vm1, %v979_v58, %v983_v8 }
 0x145   :  { %v937_v29 = vmax.f32 %v919_v16, 0.0  ;;  %v4936_v41 = vmax.f32 %v936_v40, %v980_v43  ;;  %v4945_v2 = vmax.f32 %v938_v37, %v984_v63  ;;  %v988_v16 = vsel %vm108_vm1, %v983_v8, %v4849_v23  ;;  %v3713_v23 = vld [vmem:[%s5719_s3 + $0x10] sm:$0xff] }
 0x146   :  { %3829 = vrot.lane.b32.xlu1 %v3828_v56, %s4068_s2  ;;  %v4957_v52 = vmax.f32 %v940_v57, %v988_v16 }
 0x147   :  { %v977_v11 = vrot.slane %v937_v29, 1 }
 0x148   :  { %v891_v12 = vpop.f32.mrf.mxu0 }
 0x149   :  { %v892_v19 = vadd.f32 %v891_v12, %v863_v1  ;;  %v920_v59 = vpop.f32.mrf.mxu1  ;;  %v978_v47 = vsel %vm108_vm1, %v973_v61, %v977_v11  ;;  %v3714_v1 = vld [vmem:[%s5719_s3 + $0x18] sm:$0xff] }
 0x14a   :  { %v4920_v15 = vmax.f32 %v935_v49, %v978_v47  ;;  %1908 = vmatpush.bf16.msra.mxu2 %v3714_v1 }
 0x14b   :  { %v921_v28 = vadd.f32 %v920_v59, %v892_v19 }
 0x14c   :  { %v3833_v32 = vpack.i.bf16 %v4920_v15, %v4918_v60 }
 0x14d   :  { %v939_v33 = vmax.f32 %v921_v28, 0.0 }
 0x14e   :  { %3834 = vrot.lane.b32.xlu1 %v3833_v32, %s4068_s2  ;;  %1909 = vmatpush.bf16.msra.mxu2 %v3713_v23 }
 0x14f   :  { %v981_v4 = vrot.slane %v939_v33, 1 }
 0x150   :  { %v894_v35 = vpop.f32.mrf.mxu0 }
 0x151   :  { %v895_v44 = vadd.f32 %v894_v35, %v866_v30  ;;  %v923_v50 = vpop.f32.mrf.mxu1  ;;  %v982_v38 = vsel %vm108_vm1, %v977_v11, %v981_v4  ;;  %v3712_v11 = vld [vmem:[%s5719_s3 + $0x8] sm:$0xff] }
 0x152   :  { %v4938_v3 = vmax.f32 %v937_v29, %v982_v38  ;;  %1910 = vmatpush.bf16.msra.mxu2 %v3712_v11 }
 0x153   :  { %v924_v49 = vadd.f32 %v923_v50, %v895_v44 }
 0x154   :  { %v3838_v61 = vpack.i.bf16 %v4938_v3, %v4936_v41 }
 0x155   :  { %v941_v39 = vmax.f32 %v924_v49, 0.0 }
 0x156   :  { %3839 = vrot.lane.b32.xlu2 %v3838_v61, %s4068_s2  ;;  %1911 = vmatpush.bf16.msra.mxu2 %v3711_v10 }
 0x157   :  { %v985_v14 = vrot.slane %v941_v39, 1 }
 0x158   :  { %v896_v24 = vpop.f32.mrf.mxu0 }
 0x159   :  { %v897_v40 = vadd.f32 %v896_v24, %v868_v54  ;;  %v986_v0 = vsel %vm108_vm1, %v981_v4, %v985_v14  ;;  %v925_v51 = vpop.f32.mrf.mxu1 }
 0x15a   :  { %v4947_v27 = vmax.f32 %v939_v33, %v986_v0 }
 0x15b   :  { %v926_v26 = vadd.f32 %v925_v51, %v897_v40 }
 0x15c   :  { %v3843_v62 = vpack.i.bf16 %v4947_v27, %v4945_v2 }
 0x15d   :  { %v943_v7 = vmax.f32 %v926_v26, 0.0 }
 0x15e   :  { %3844 = vrot.lane.b32.xlu2 %v3843_v62, %s4068_s2 }
 0x15f   :  { %v989_v9 = vrot.slane %v943_v7, 1 }
 0x161   :  { %v4954_v56 = vmax.f32 %v943_v7, %v989_v9  ;;  %v990_v29 = vsel %vm108_vm1, %v985_v14, %v989_v9  ;;  %vm2712_vm1 = vcmask 1040384  }
 0x162   :  { %v4959_v42 = vmax.f32 %v941_v39, %v990_v29 }
 0x164   :  { %v3848_v37 = vpack.i.bf16 %v4959_v42, %v4957_v52 }
 0x166   :  { %3849 = vrot.lane.b32.xlu0 %v3848_v37, %s4068_s2 }
 0x1a8   :  { %v3820_v12 = vpop.permute.xlu0 %3819 }
 0x1a9   :  { %v3822_v48 = vunpack.i.h.bf16 %v3820_v12  ;;  %v3821_v18 = vunpack.i.l.bf16 %v3820_v12 }
 0x1ab   :  { %v1072_v59 = vsel %vm1071_vm4, %v3821_v18, %v3822_v48  ;;  %v4990_v30 = vmax.f32 %v4870_v20, %v3822_v48 }
 0x1ac   :  { %v4979_v46 = vmax.f32 %v4868_v13, %v1072_v59 }
 0x1ad   :  { %v1130_v44 = vrot.slane %v4990_v30, 2 }
 0x1ae   :  { %v1204_v38 = vrot.slane %v4979_v46, 4  ;;  %v1127_v55 = vrot.slane %v4979_v46, 2 }
 0x1b0   :  { %v3825_v19 = vpop.permute.xlu0 %3824  ;;  %v3840_v5 = vpop.permute.xlu2 %3839 }
 0x1b1   :  { %v3827_v47 = vunpack.i.h.bf16 %v3825_v19  ;;  %v3826_v21 = vunpack.i.l.bf16 %v3825_v19  ;;  %v3842_v34 = vunpack.i.h.bf16 %v3840_v5  ;;  %v3841_v13 = vunpack.i.l.bf16 %v3840_v5 }
 0x1b3   :  { %v1073_v58 = vsel %vm1071_vm4, %v3826_v21, %v3827_v47  ;;  %v4987_v33 = vmax.f32 %v4887_v31, %v3827_v47 }
 0x1b4   :  { %v4982_v28 = vmax.f32 %v4885_v17, %v1073_v58 }
 0x1b5   :  { %v1131_v6 = vrot.slane %v4987_v33, 2 }
 0x1b6   :  { %v1448_v32 = vpack.c.bf16 %v4982_v28, %v4979_v46  ;;  %v1205_v22 = vrot.slane %v4982_v28, 4  ;;  %v1128_v20 = vrot.slane %v4982_v28, 2 }
 0x1b7   :  { %v1132_v36 = vsel %vm140_vm3, %v1130_v44, %v1131_v6 }
 0x1b8   :  { %v3830_v57 = vpop.permute.xlu1 %3829  ;;  %1912 = vmatmul.bf16.vlgmr.msra.gmra.mxu2 %v1448_v32  ;;  %v1206_v39 = vsel %vm1203_vm5, %v1204_v38, %v1205_v22  ;;  %v3845_v12 = vpop.permute.xlu2 %3844 }
 0x1b9   :  { %v3832_v4 = vunpack.i.h.bf16 %v3830_v57  ;;  %v3831_v43 = vunpack.i.l.bf16 %v3830_v57  ;;  %v3847_v32 = vunpack.i.h.bf16 %v3845_v12  ;;  %v3846_v5 = vunpack.i.l.bf16 %v3845_v12 }
 0x1bb   :  { %v4993_v35 = vmax.f32 %v4902_v45, %v3832_v4  ;;  %v1074_v17 = vsel %vm1071_vm4, %v3831_v43, %v3832_v4  ;;  %v5006_v45 = vmax.f32 %v4938_v3, %v3842_v34  ;;  %v1129_v3 = vsel %vm140_vm3, %v1127_v55, %v1128_v20 }
 0x1bc   :  { %v4999_v31 = vmax.f32 %v4900_v53, %v1074_v17  ;;  %v1076_v53 = vsel %vm1071_vm4, %v3841_v13, %v3842_v34  ;;  %v1077_v57 = vsel %vm1071_vm4, %v3846_v5, %v3847_v32  ;;  %v5055_v34 = vmax.f32 %v4947_v27, %v3847_v32 }
 0x1bd   :  { %v1135_v50 = vrot.slane %v4993_v35, 2  ;;  %v5019_v62 = vmax.f32 %v4936_v41, %v1076_v53  ;;  %v1143_v41 = vrot.slane %v5006_v45, 2  ;;  %v5050_v4 = vmax.f32 %v4945_v2, %v1077_v57 }
 0x1be   :  { %v1210_v8 = vrot.slane %v4999_v31, 4  ;;  %v1133_v49 = vrot.slane %v4999_v31, 2  ;;  %v1147_v44 = vrot.slane %v5055_v34, 2  ;;  %v3928_v57 = vpack.i.bf16 %v4993_v35, %v4987_v33 }
 0x1bf   :  { %v1136_v61 = vsel %vm140_vm3, %v1131_v6, %v1135_v50  ;;  %v1218_v1 = vrot.slane %v5019_v62, 4  ;;  %v1462_v43 = vpack.c.bf16 %v5050_v4, %v5019_v62  ;;  %v1222_v2 = vrot.slane %v5050_v4, 4 }
 0x1c0   :  { %v3835_v54 = vpop.permute.xlu1 %3834  ;;  %v3858_v14 = vpack.i.bf16 %v1136_v61, %v1132_v36  ;;  %v1211_v63 = vsel %vm1203_vm5, %v1205_v22, %v1210_v8  ;;  %v1134_v24 = vsel %vm140_vm3, %v1128_v20, %v1133_v49  ;;  %v1145_v38 = vrot.slane %v5050_v4, 2 }
 0x1c1   :  { %v3837_v40 = vunpack.i.h.bf16 %v3835_v54  ;;  %v3836_v0 = vunpack.i.l.bf16 %v3835_v54  ;;  %v3863_v51 = vpack.i.bf16 %v1211_v63, %v1206_v39  ;;  %v3853_v26 = vpack.i.bf16 %v1134_v24, %v1129_v3 }
 0x1c2   :  { %3859 = vrot.lane.b32.xlu2 %v3858_v14, %s4069_s12  ;;  %v1223_v53 = vsel %vm1203_vm5, %v1218_v1, %v1222_v2  ;;  %v1284_v63 = vrot.slane %v4982_v28, 6  ;;  %v1287_v3 = vrot.slane %v4987_v33, 6  ;;  %v1208_v24 = vrot.slane %v4987_v33, 4 }
 0x1c3   :  { %v5023_v7 = vmax.f32 %v4920_v15, %v3837_v40  ;;  %v1075_v9 = vsel %vm1071_vm4, %v3836_v0, %v3837_v40  ;;  %3864 = vrot.lane.b32.xlu0 %v3863_v51, %s4070_s13  ;;  %3854 = vrot.lane.b32.xlu1 %v3853_v26, %s4069_s12  ;;  %v1283_v40 = vrot.slane %v4979_v46, 6  ;;  %v1286_v0 = vrot.slane %v4990_v30, 6 }
 0x1c4   :  { %v5029_v16 = vmax.f32 %v4918_v60, %v1075_v9  ;;  %v1141_v60 = vrot.slane %v5019_v62, 2  ;;  %v1207_v51 = vrot.slane %v4990_v30, 4 }
 0x1c5   :  { %v1139_v29 = vrot.slane %v5023_v7, 2  ;;  %v1285_v9 = vsel %vm1282_vm6, %v1283_v40, %v1284_v63  ;;  %v1216_v46 = vrot.slane %v5023_v7, 4 }
 0x1c6   :  { %v1455_v37 = vpack.c.bf16 %v5029_v16, %v4999_v31  ;;  %v1214_v15 = vrot.slane %v5029_v16, 4  ;;  %v1137_v23 = vrot.slane %v5029_v16, 2 }
 0x1c7   :  { %v1140_v11 = vsel %vm140_vm3, %v1135_v50, %v1139_v29  ;;  %v1144_v10 = vsel %vm140_vm3, %v1139_v29, %v1143_v41  ;;  %v1288_v29 = vsel %vm1282_vm6, %v1286_v0, %v1287_v3  ;;  %v3953_v0 = vpack.i.bf16 %v5006_v45, %v5023_v7 }
 0x1c8   :  { %1917 = vmatmul.bf16.gmra.mxu2 %v1455_v37  ;;  %v3873_v48 = vpack.i.bf16 %v1144_v10, %v1140_v11  ;;  %v1215_v18 = vsel %vm1203_vm5, %v1210_v8, %v1214_v15  ;;  %v1219_v19 = vsel %vm1203_vm5, %v1214_v15, %v1218_v1  ;;  %v1138_v59 = vsel %vm140_vm3, %v1133_v49, %v1137_v23 }
 0x1c9   :  { %v3878_v47 = vpack.i.bf16 %v1219_v19, %v1215_v18  ;;  %v1142_v21 = vsel %vm140_vm3, %v1137_v23, %v1141_v60  ;;  %v3908_v15 = vpack.i.bf16 %v1288_v29, %v1285_v9  ;;  %v1289_v23 = vrot.slane %v4999_v31, 6  ;;  %v3730_v29 = vld [vmem:[%s5719_s3 + $0x98] sm:$0xff] }
 0x1ca   :  { %3874 = vrot.lane.b32.xlu2 %v3873_v48, %s4069_s12  ;;  %v3868_v58 = vpack.i.bf16 %v1142_v21, %v1138_v59  ;;  %v1291_v11 = vrot.slane %v4993_v35, 6  ;;  %v1212_v10 = vrot.slane %v4993_v35, 4  ;;  %v3918_v18 = vpack.i.bf16 %v4999_v31, %v4982_v28 }
 0x1cb   :  { %3879 = vrot.lane.b32.xlu0 %v3878_v47, %s4070_s13  ;;  %v1290_v12 = vsel %vm1282_vm6, %v1284_v63, %v1289_v23  ;;  %v1293_v21 = vrot.slane %v5029_v16, 6  ;;  %v3933_v28 = vpack.i.bf16 %v4954_v56, %v4852_v25  ;;  %v1224_v9 = vrot.slane %v5055_v34, 4 }
 0x1cc   :  { %3869 = vrot.lane.b32.xlu1 %v3868_v58, %s4069_s12  ;;  %v1292_v48 = vsel %vm1282_vm6, %v1287_v3, %v1291_v11  ;;  %v1213_v19 = vsel %vm1203_vm5, %v1208_v24, %v1212_v10  ;;  %v1295_v58 = vrot.slane %v5023_v7, 6 }
 0x1cd   :  { %v3913_v47 = vpack.i.bf16 %v1292_v48, %v1290_v12  ;;  %v1294_v32 = vsel %vm1282_vm6, %v1289_v23, %v1293_v21  ;;  %v3727_v12 = vld [vmem:[%s5719_s3 + $0x80] sm:$0xff] }
 0x1ce   :  { %v1296_v5 = vsel %vm1282_vm6, %v1291_v11, %v1295_v58 }
 0x1cf   :  { %v3938_v31 = vpack.i.bf16 %v1296_v5, %v1294_v32 }
 0x1d8   :  { %v3850_v13 = vpop.permute.xlu0 %3849  ;;  %1922 = vmatmul.bf16.gmra.mxu2 %v1462_v43  ;;  %v3726_v43 = vld [vmem:[%s5719_s3 + $0x78] sm:$0xff] }
 0x1d9   :  { %v3852_v17 = vunpack.i.h.bf16 %v3850_v13  ;;  %v3851_v6 = vunpack.i.l.bf16 %v3850_v13  ;;  %v1297_v13 = vrot.slane %v5019_v62, 6  ;;  %1932 = vmatpush.bf16.msra.mxu3 %v3726_v43 }
 0x1db   :  { %v5058_v22 = vmax.f32 %v4959_v42, %v3852_v17  ;;  %v1078_v20 = vsel %vm1071_vm4, %v3851_v6, %v3852_v17  ;;  %v1148_v42 = vsel %vm140_vm3, %v1143_v41, %v1147_v44  ;;  %v1209_v41 = vsel %vm1203_vm5, %v1207_v51, %v1208_v24  ;;  %v3734_v6 = vld [vmem:[%s5719_s3 + $0xb8] sm:$0xff]  ;;  %v3731_v24 = vld [vmem:[%s5719_s3 + $0xa0] sm:$0xff] }
 0x1dc   :  { %v5064_v50 = vmax.f32 %v4957_v52, %v1078_v20  ;;  %v1146_v52 = vsel %vm140_vm3, %v1141_v60, %v1145_v38  ;;  %v1217_v60 = vsel %vm1203_vm5, %v1212_v10, %v1216_v46  ;;  %v1299_v17 = vrot.slane %v5006_v45, 6  ;;  %v3725_v20 = vld [vmem:[%s5719_s3 + $0x70] sm:$0xff]  ;;  %1960 = vmatpush.bf16.msrb.mxu0 %v3734_v6  ;;  %v3720_v10 = vld [vmem:[%s5719_s3 + $0x48] sm:$0xff] }
 0x1dd   :  { %v1151_v27 = vrot.slane %v5058_v22, 2  ;;  %v3923_v59 = vpack.i.bf16 %v1217_v60, %v1213_v19  ;;  %1933 = vmatpush.bf16.msra.mxu3 %v3725_v20  ;;  %v1228_v51 = vrot.slane %v5058_v22, 4  ;;  %v3978_v23 = vpack.i.bf16 %v5058_v22, %v5055_v34  ;;  %v3728_v60 = vld [vmem:[%s5719_s3 + $0x88] sm:$0xff]  ;;  %v3742_v19 = vld [vmem:[%s5719_s3 + $0xf8] sm:$0xff] }
 0x1de   :  { %v1226_v8 = vrot.slane %v5064_v50, 4  ;;  %v1149_v55 = vrot.slane %v5064_v50, 2  ;;  %v1469_v26 = vpack.c.bf16 %v5064_v50, %v5064_v50  ;;  %v3968_v11 = vpack.i.bf16 %v5064_v50, %v5050_v4  ;;  %1988 = vmatpush.bf16.msrb.mxu1 %v3742_v19  ;;  %v3735_v19 = vld [vmem:[%s5719_s3 + $0xc0] sm:$0xff] }
 0x1df   :  { %v1152_v49 = vsel %vm140_vm3, %v1147_v44, %v1151_v27  ;;  %v1298_v44 = vsel %vm1282_vm6, %v1293_v21, %v1297_v13 }
 0x1e0   :  { %v3888_v36 = vpack.i.bf16 %v1152_v49, %v1148_v42  ;;  %v1227_v61 = vsel %vm1203_vm5, %v1222_v2, %v1226_v8  ;;  %v1150_v39 = vsel %vm140_vm3, %v1145_v38, %v1149_v55  ;;  %v3903_v37 = vpack.i.bf16 %v1209_v41, %v1226_v8  ;;  %v3733_v8 = vld [vmem:[%s5719_s3 + $0xb0] sm:$0xff] }
 0x1e1   :  { %v3893_v54 = vpack.i.bf16 %v1227_v61, %v1223_v53  ;;  %v3883_v14 = vpack.i.bf16 %v1150_v39, %v1146_v52  ;;  %v3898_v1 = vpack.i.bf16 %v1151_v27, %v1149_v55  ;;  %v1300_v2 = vsel %vm1282_vm6, %v1295_v58, %v1299_v17  ;;  %v3724_v53 = vld [vmem:[%s5719_s3 + $0x68] sm:$0xff]  ;;  %1961 = vmatpush.bf16.msrb.mxu0 %v3733_v8 }
 0x1e2   :  { %3889 = vrot.lane.b32.xlu2 %v3888_v36, %s4069_s12  ;;  %v3948_v38 = vpack.i.bf16 %v5019_v62, %v5029_v16  ;;  %v1220_v27 = vrot.slane %v5006_v45, 4  ;;  %v3943_v55 = vpack.i.bf16 %v1300_v2, %v1298_v44  ;;  %v1301_v42 = vrot.slane %v5050_v4, 6  ;;  %1934 = vmatpush.bf16.msra.mxu3 %v3724_v53  ;;  %v3732_v39 = vld [vmem:[%s5719_s3 + $0xa8] sm:$0xff]  ;;  %v3719_v4 = vld [vmem:[%s5719_s3 + $0x40] sm:$0xff] }
 0x1e3   :  { %3894 = vrot.lane.b32.xlu0 %v3893_v54, %s4070_s13  ;;  %3884 = vrot.lane.b32.xlu1 %v3883_v14, %s4069_s12  ;;  %v1303_v49 = vrot.slane %v5055_v34, 6  ;;  %v1305_v16 = vrot.slane %v5064_v50, 6  ;;  %v1307_v36 = vrot.slane %v5058_v22, 6  ;;  %v3723_v54 = vld [vmem:[%s5719_s3 + $0x60] sm:$0xff]  ;;  %v1229_v41 = vsel %vm1203_vm5, %v1224_v9, %v1228_v51  ;;  %v3748_v58 = vld [vmem:[%s5719_s3 + $0x128] sm:$0xff] }
 0x1e4   :  { %v1221_v62 = vsel %vm1203_vm5, %v1216_v46, %v1220_v27  ;;  %v1302_v61 = vsel %vm1282_vm6, %v1297_v13, %v1301_v42  ;;  %v3729_v46 = vld [vmem:[%s5719_s3 + $0x90] sm:$0xff] }
 0x1e5   :  { %v1304_v52 = vsel %vm1282_vm6, %v1299_v17, %v1303_v49  ;;  %v1306_v14 = vsel %vm1282_vm6, %v1301_v42, %v1305_v16  ;;  %v1308_v63 = vsel %vm1282_vm6, %v1303_v49, %v1307_v36  ;;  %1962 = vmatpush.bf16.msrb.mxu0 %v3732_v39  ;;  %v3738_v39 = vld [vmem:[%s5719_s3 + $0xd8] sm:$0xff] }
 0x1e6   :  { %v3958_v3 = vpack.i.bf16 %v1304_v52, %v1302_v61  ;;  %v3963_v40 = vpack.i.bf16 %v1308_v63, %v1306_v14  ;;  %1935 = vmatpush.bf16.msra.mxu3 %v3723_v54  ;;  %v3758_v61 = vld [vmem:[%s5719_s3 + $0x178] sm:$0xff] }
 0x1e8   :  { %1927 = vmatmul.bf16.gmra.mxu2 %v1469_v26  ;;  %v3722_v26 = vld [vmem:[%s5719_s3 + $0x58] sm:$0xff] }
 0x1e9   :  { %1963 = vmatpush.bf16.msrb.mxu0 %v3731_v24  ;;  %v3757_v24 = vld [vmem:[%s5719_s3 + $0x170] sm:$0xff] }
 0x1ea   :  { %3904 = vrot.lane.b32.xlu2 %v3903_v37, %s4070_s13  ;;  %1936 = vmatpush.bf16.msra.mxu3 %v3722_v26  ;;  %v3721_v37 = vld [vmem:[%s5719_s3 + $0x50] sm:$0xff] }
 0x1eb   :  { %3909 = vrot.lane.b32.xlu0 %v3908_v15, %s4071_s14  ;;  %3899 = vrot.lane.b32.xlu1 %v3898_v1, %s4069_s12  ;;  %v1225_v15 = vsel %vm1203_vm5, %v1220_v27, %v1224_v9  ;;  %s2884_s12 = sshll.u32 %s4078_s30, 4  ;;  %s2885_s12 = int_to_ptr.vmem [resolvable:$true] %s2884_s12 }
 0x1ec   :  { %v3973_v1 = vpack.i.bf16 %v1229_v41, %v1225_v15 }
 0x1ed   :  { %1964 = vmatpush.bf16.msrb.mxu0 %v3730_v29  ;;  %v3737_v29 = vld [vmem:[%s5719_s3 + $0xd0] sm:$0xff] }
 0x1ee   :  { %1937 = vmatpush.bf16.msra.mxu3 %v3721_v37 }
 0x1f1   :  { %1965 = vmatpush.bf16.msrb.mxu0 %v3729_v46  ;;  %v3756_v46 = vld [vmem:[%s5719_s3 + $0x168] sm:$0xff] }
 0x1f2   :  { %3919 = vrot.lane.b32.xlu2 %v3918_v18, %s4072_s1  ;;  %1938 = vmatpush.bf16.msra.mxu3 %v3720_v10  ;;  %v3750_v18 = vld [vmem:[%s5719_s3 + $0x138] sm:$0xff] }
 0x1f3   :  { %3924 = vrot.lane.b32.xlu0 %v3923_v59, %s4070_s13  ;;  %3914 = vrot.lane.b32.xlu1 %v3913_v47, %s4071_s14  ;;  %v3749_v59 = vld [vmem:[%s5719_s3 + $0x130] sm:$0xff] }
 0x1f4   :  { %2016 = vmatpush.bf16.msrb.mxu2 %v3750_v18  ;;  %v3741_v47 = vld [vmem:[%s5719_s3 + $0xf0] sm:$0xff] }
 0x1f5   :  { %1966 = vmatpush.bf16.msrb.mxu0 %v3728_v60  ;;  %1989 = vmatpush.bf16.msrb.mxu1 %v3741_v47  ;;  %v3761_v47 = vld [vmem:[%s5719_s3 + $0x190] sm:$0x10] }
 0x1f6   :  { %1939 = vmatpush.bf16.msra.mxu3 %v3719_v4  ;;  %v3736_v4 = vld [vmem:[%s5719_s3 + $0xc8] sm:$0xff] }
 0x1f8   :  { %2017 = vmatpush.bf16.msrb.mxu2 %v3749_v59  ;;  %v3433_v59 = vld [vmem:[%s5719_s3 + $0x190] sm:$0xf] }
 0x1f9   :  { %1967 = vmatpush.bf16.msrb.mxu0 %v3727_v12 }
 0x1fa   :  { %3934 = vrot.lane.b32.xlu2 %v3933_v28, %s4068_s2  ;;  %2044 = vmatpush.bf16.msrb.mxu3 %v3758_v61 }
 0x1fb   :  { %3939 = vrot.lane.b32.xlu0 %v3938_v31, %s4071_s14  ;;  %3929 = vrot.lane.b32.xlu1 %v3928_v57, %s4072_s1 }
 0x1fc   :  { %2018 = vmatpush.bf16.msrb.mxu2 %v3748_v58  ;;  %v3434_v58 = vor.u32 %v3761_v47, %v3433_v59 }
 0x1fe   :  { %2045 = vmatpush.bf16.msrb.mxu3 %v3757_v24 }
 0x202   :  { %3949 = vrot.lane.b32.xlu2 %v3948_v38, %s4072_s1  ;;  %2046 = vmatpush.bf16.msrb.mxu3 %v3756_v46 }
 0x203   :  { %1244 = vrot.lane.b32.xlu0 %v1221_v62, %s4070_s13  ;;  %3944 = vrot.lane.b32.xlu1 %v3943_v55, %s4071_s14  ;;  %v3740_v55 = vld [vmem:[%s5719_s3 + $0xe8] sm:$0xff]  ;;  %v3746_v62 = vld [vmem:[%s5719_s3 + $0x118] sm:$0xff] }
 0x204   :  { %1990 = vmatpush.bf16.msrb.mxu1 %v3740_v55  ;;  %v3752_v55 = vld [vmem:[%s5719_s3 + $0x148] sm:$0xff] }
 0x20a   :  { %3959 = vrot.lane.b32.xlu2 %v3958_v3, %s4071_s14  ;;  %v3745_v3 = vld [vmem:[%s5719_s3 + $0x110] sm:$0xff] }
 0x20b   :  { %3964 = vrot.lane.b32.xlu0 %v3963_v40, %s4071_s14  ;;  %3954 = vrot.lane.b32.xlu1 %v3953_v0, %s4072_s1 }
 0x212   :  { %3974 = vrot.lane.b32.xlu2 %v3973_v1, %s4070_s13  ;;  %v3744_v1 = vld [vmem:[%s5719_s3 + $0x108] sm:$0xff] }
 0x213   :  { %3979 = vrot.lane.b32.xlu0 %v3978_v23, %s4072_s1  ;;  %3969 = vrot.lane.b32.xlu1 %v3968_v11, %s4072_s1 }
 0x21b   :  { %1256 = vrot.lane.b32.xlu0 %v1228_v51, %s4070_s13 }
 0x21c   :  { %v3860_v48 = vpop.permute.xlu2 %3859 }
 0x21d   :  { %v3862_v32 = vunpack.i.h.bf16 %v3860_v48  ;;  %v3861_v5 = vunpack.i.l.bf16 %v3860_v48  ;;  %v3755_v48 = vld [vmem:[%s5719_s3 + $0x160] sm:$0xff] }
 0x21e   :  { %2047 = vmatpush.bf16.msrb.mxu3 %v3755_v48 }
 0x224   :  { %v3875_v21 = vpop.permute.xlu2 %3874 }
 0x225   :  { %v3877_v40 = vunpack.i.h.bf16 %v3875_v21  ;;  %v3876_v0 = vunpack.i.l.bf16 %v3875_v21 }
 0x235   :  { %v5220_v28 = vpop.permute.xlu0 %3864  ;;  %v3855_v31 = vpop.permute.xlu1 %3854 }
 0x236   :  { %v3867_v57 = vunpack.i.h.bf16 %v5220_v28  ;;  %v3866_v43 = vunpack.i.l.bf16 %v5220_v28  ;;  %v3857_v13 = vunpack.i.h.bf16 %v3855_v31  ;;  %v3856_v17 = vunpack.i.l.bf16 %v3855_v31  ;;  %v3753_v31 = vld [vmem:[%s5719_s3 + $0x150] sm:$0xff] }
 0x238   :  { %v1183_v6 = vsel %vm1181_vm7, %v3857_v13, %v3862_v32  ;;  %v1421_v20 = vsel %vm1181_vm7, %v4987_v33, %v3857_v13  ;;  %v1182_v44 = vsel %vm1181_vm7, %v3856_v17, %v3861_v5  ;;  %v1420_v2 = vsel %vm1181_vm7, %v4990_v30, %v3856_v17  ;;  %v3747_v33 = vld [vmem:[%s5719_s3 + $0x120] sm:$0xff]  ;;  %v3754_v32 = vld [vmem:[%s5719_s3 + $0x158] sm:$0xff]  ;;  %v3760_v17 = vld [vmem:[%s5719_s3 + $0x188] sm:$0xff] }
 0x239   :  { %v1428_v38 = vsel %vm1258_vm8, %v1183_v6, %v3867_v57  ;;  %v1427_v27 = vsel %vm1258_vm8, %v1182_v44, %v3866_v43  ;;  %v1449_v8 = vpack.c.bf16 %v1421_v20, %v1420_v2  ;;  %v3739_v30 = vld [vmem:[%s5719_s3 + $0xe0] sm:$0xff]  ;;  %2019 = vmatpush.bf16.msrb.mxu2 %v3747_v33  ;;  %v1902_v5 = vsel %vm1900_vm9, %v3434_v58, 0  ;;  %2048 = vmatpush.bf16.msrb.mxu3 %v3754_v32 }
 0x23a   :  { %v1450_v42 = vpack.c.bf16 %v1428_v38, %v1427_v27  ;;  %1991 = vmatpush.bf16.msrb.mxu1 %v3739_v30  ;;  %2077 = vmatpush.bf16.msra.mxu0 %v1902_v5 }
 0x23b   :  { %v5242_v49 = vpop.f32.mrf.mxu2  ;;  %1940 = vmatmul.bf16.vlgmr.msra.gmra.mxu3 %v1449_v8 }
 0x23c   :  { %v5247_v53 = vpop.permute.xlu2 %3889  ;;  %1968 = vmatmul.bf16.vlgmr.msrb.gmra.mxu0 %v1450_v42 }
 0x23d   :  { %v5258_v54 = vpop.permute.xlu0 %3879  ;;  %2020 = vmatpush.bf16.msrb.mxu2 %v3746_v62  ;;  %v3892_v20 = vunpack.i.h.bf16 %v5247_v53  ;;  %v3891_v44 = vunpack.i.l.bf16 %v5247_v53  ;;  %2049 = vmatpush.bf16.msrb.mxu3 %v3753_v31  ;;  %v3759_v53 = vld [vmem:[%s5719_s3 + $0x180] sm:$0xff] }
 0x23e   :  { %v3870_v52 = vpop.permute.xlu1 %3869  ;;  %v3882_v51 = vunpack.i.h.bf16 %v5258_v54  ;;  %v3881_v26 = vunpack.i.l.bf16 %v5258_v54  ;;  %1992 = vmatpush.bf16.msrb.mxu1 %v3738_v39  ;;  %2078 = vmatpush.bf16.msra.mxu0 %v3760_v17 }
 0x23f   :  { %v3872_v14 = vunpack.i.h.bf16 %v3870_v52  ;;  %v3871_v63 = vunpack.i.l.bf16 %v3870_v52 }
 0x241   :  { %v1185_v41 = vsel %vm1181_vm7, %v3872_v14, %v3877_v40  ;;  %v1184_v37 = vsel %vm1181_vm7, %v3871_v63, %v3876_v0  ;;  %2021 = vmatpush.bf16.msrb.mxu2 %v3745_v3  ;;  %v1422_v23 = vsel %vm1181_vm7, %v4993_v35, %v3871_v63  ;;  %v1423_v11 = vsel %vm1181_vm7, %v5023_v7, %v3872_v14  ;;  %v3743_v7 = vld [vmem:[%s5719_s3 + $0x100] sm:$0xff] }
 0x242   :  { %v1429_v10 = vsel %vm1258_vm8, %v1184_v37, %v3881_v26  ;;  %v1430_v60 = vsel %vm1258_vm8, %v1185_v41, %v3882_v51  ;;  %1993 = vmatpush.bf16.msrb.mxu1 %v3737_v29  ;;  %v1456_v12 = vpack.c.bf16 %v1423_v11, %v1422_v23  ;;  %2050 = vmatpush.bf16.msrb.mxu3 %v3752_v55 }
 0x243   :  { %v5268_v9 = vpop.f32.mrf.mxu2  ;;  %v1457_v35 = vpack.c.bf16 %v1430_v60, %v1429_v10  ;;  %2079 = vmatpush.bf16.msra.mxu0 %v3759_v53 }
 0x244   :  { %v5275_v15 = vpop.permute.xlu2 %3904 }
 0x245   :  { %2022 = vmatpush.bf16.msrb.mxu2 %v3744_v1 }
 0x246   :  { %1994 = vmatpush.bf16.msrb.mxu1 %v3736_v4 }
 0x249   :  { %2023 = vmatpush.bf16.msrb.mxu2 %v3743_v7 }
 0x24a   :  { %1995 = vmatpush.bf16.msrb.mxu1 %v3735_v19 }
 0x24b   :  { %v5302_v18 = vpop.f32.mrf.mxu2  ;;  %1945 = vmatmul.bf16.gmra.mxu3 %v1456_v12  ;;  %v3907_v12 = vunpack.i.h.bf16 %v5275_v15 }
 0x24c   :  { %v5313_v21 = vpop.permute.xlu2 %3919  ;;  %1973 = vmatmul.bf16.gmra.mxu0 %v1457_v35 }
 0x24d   :  { %v1259_v5 = vsel %vm1258_vm8, %v3866_v43, %v3907_v12 }
 0x253   :  { %v5321_v13 = vpop.f32.mrf.mxu2 }
 0x254   :  { %v3935_v6 = vpop.permute.xlu2 %3934 }
 0x255   :  { %v3937_v2 = vunpack.i.h.bf16 %v3935_v6  ;;  %v3936_v38 = vunpack.i.l.bf16 %v3935_v6  ;;  %v5328_v27 = vpop.permute.xlu0 %3894  ;;  %v3885_v8 = vpop.permute.xlu1 %3884 }
 0x256   :  { %v3897_v33 = vunpack.i.h.bf16 %v5328_v27  ;;  %v3896_v42 = vunpack.i.l.bf16 %v5328_v27  ;;  %v3887_v30 = vunpack.i.h.bf16 %v3885_v8  ;;  %v3886_v62 = vunpack.i.l.bf16 %v3885_v8 }
 0x257   :  { %v1111_v61 = vmax.f32 %v4954_v56, %v3937_v2  ;;  %v1079_v52 = vsel %vm1071_vm4, %v3936_v38, %v3937_v2  ;;  %v5394_v2 = vld [vmem:[%s5720_s4] ss:$0 sm:$0xff]  ;;  %s4073_s4 = smov 116   ;;  %vm2708_vm4 = vcmask 269312  }
 0x258   :  { %v1187_v39 = vsel %vm1181_vm7, %v3887_v30, %v3892_v20  ;;  %v1186_v14 = vsel %vm1181_vm7, %v3886_v62, %v3891_v44  ;;  %v1110_v63 = vmax.f32 %v4852_v25, %v1079_v52  ;;  %v1424_v3 = vsel %vm1181_vm7, %v5006_v45, %v3886_v62  ;;  %v3751_v25 = vld [vmem:[%s5719_s3 + $0x140] sm:$0xff] }
 0x259   :  { %v1311_v24 = vrot.slane %v1111_v61, 6  ;;  %v1425_v40 = vsel %vm1181_vm7, %v5055_v34, %v3887_v30  ;;  %v1431_v0 = vsel %vm1258_vm8, %v1186_v14, %v3896_v42  ;;  %v1432_v56 = vsel %vm1258_vm8, %v1187_v39, %v3897_v33  ;;  %2051 = vmatpush.bf16.msrb.mxu3 %v3751_v25 }
 0x25a   :  { %1394 = vrot.lane.b32.xlu2 %v1110_v63, %s4072_s1  ;;  %v1309_v45 = vrot.slane %v1110_v63, 6  ;;  %v1463_v29 = vpack.c.bf16 %v1425_v40, %v1424_v3  ;;  %v1464_v41 = vpack.c.bf16 %v1432_v56, %v1431_v0  ;;  %v3921_v40 = vunpack.i.l.bf16 %v5313_v21 }
 0x25b   :  { %v5357_v34 = vpop.f32.mrf.mxu2  ;;  %v1312_v37 = vsel %vm1282_vm6, %v1307_v36, %v1311_v24  ;;  %v3922_v24 = vunpack.i.h.bf16 %v5313_v21 }
 0x25c   :  { %1950 = vmatmul.bf16.gmra.mxu3 %v1463_v29  ;;  %1978 = vmatmul.bf16.gmra.mxu0 %v1464_v41  ;;  %v1310_v1 = vsel %vm1282_vm6, %v1305_v16, %v1309_v45  ;;  %v3906_v16 = vunpack.i.l.bf16 %v5275_v15  ;;  %v5396_v38 = vpop.permute.xlu2 %3949 }
 0x25d   :  { %v5365_v46 = vpop.permute.xlu0 %3909  ;;  %v3900_v23 = vpop.permute.xlu1 %3899  ;;  %v3983_v11 = vpack.i.bf16 %v1312_v37, %v1310_v1 }
 0x25e   :  { %v3902_v10 = vunpack.i.h.bf16 %v3900_v23  ;;  %v3901_v60 = vunpack.i.l.bf16 %v3900_v23  ;;  %v3912_v36 = vunpack.i.h.bf16 %v5365_v46  ;;  %v3911_v35 = vunpack.i.l.bf16 %v5365_v46 }
 0x25f   :  { %3984 = vrot.lane.b32.xlu1 %v3983_v11, %s4071_s14 }
 0x260   :  { %v1188_v50 = vsel %vm1181_vm7, %v3901_v60, %v3902_v10  ;;  %v1426_v58 = vsel %vm1181_vm7, %v5058_v22, %v3901_v60  ;;  %v1342_v31 = vsel %vm1341_vm10, %v3911_v35, %v3912_v36  ;;  %v1434_v20 = vsel %vm1341_vm10, %v1259_v5, %v3911_v35 }
 0x261   :  { %v1433_v32 = vsel %vm1258_vm8, %v1188_v50, %v3906_v16  ;;  %v1470_v8 = vpack.c.bf16 %v1426_v58, %v1426_v58  ;;  %v1441_v10 = vsel %vm1398_vm11, %v3912_v36, %v3921_v40 }
 0x262   :  { %v1471_v55 = vpack.c.bf16 %v1433_v32, %v1433_v32 }
 0x263   :  { %v5368_v4 = vpop.f32.mrf.mxu2 }
 0x264   :  { %v5401_v14 = vpop.permute.xlu2 %3959 }
 0x265   :  { %v3925_v7 = vpop.permute.xlu0 %3924  ;;  %v3915_v48 = vpop.permute.xlu1 %3914  ;;  %v3962_v36 = vunpack.i.h.bf16 %v5401_v14  ;;  %v3961_v5 = vunpack.i.l.bf16 %v5401_v14 }
 0x266   :  { %v3926_v19 = vunpack.i.l.bf16 %v3925_v7  ;;  %v3917_v59 = vunpack.i.h.bf16 %v3915_v48  ;;  %v3916_v47 = vunpack.i.l.bf16 %v3915_v48  ;;  %v3927_v53 = vunpack.i.h.bf16 %v3925_v7 }
 0x267   :  { %1396 = vrot.lane.b32.xlu1 %v1111_v61, %s4072_s1  ;;  %s4074_s1 = smov 88  }
 0x268   :  { %v1260_v17 = vsel %vm1258_vm8, %v3867_v57, %v3926_v19  ;;  %v1343_v6 = vsel %vm1341_vm10, %v3916_v47, %v3917_v59  ;;  %v1261_v41 = vsel %vm1258_vm8, %v3881_v26, %v3927_v53  ;;  %v1442_v37 = vsel %vm1398_vm11, %v3917_v59, %v3922_v24 }
 0x269   :  { %v1435_v22 = vsel %vm1341_vm10, %v1260_v17, %v3916_v47  ;;  %v1452_v44 = vpack.c.bf16 %v1343_v6, %v1342_v31  ;;  %v1453_v26 = vpack.c.bf16 %v1442_v37, %v1441_v10  ;;  %v3952_v31 = vunpack.i.h.bf16 %v5396_v38 }
 0x26a   :  { %v1451_v43 = vpack.c.bf16 %v1435_v22, %v1434_v20  ;;  %v3951_v17 = vunpack.i.l.bf16 %v5396_v38 }
 0x26b   :  { %v1928_v28 = vpop.f32.mrf.mxu2  ;;  %2024 = vmatmul.bf16.vlgmr.msrb.gmra.mxu2 %v1452_v44 }
 0x26c   :  { %v5399_v57 = vadd.f32 %v5394_v2, %v1928_v28  ;;  %1955 = vmatmul.bf16.gmra.mxu3 %v1470_v8  ;;  %1983 = vmatmul.bf16.gmra.mxu0 %v1471_v55  ;;  %v3975_v35 = vpop.permute.xlu2 %3974  ;;  %v1346_v55 = vsel %vm1341_vm10, %v3961_v5, %v3962_v36 }
 0x26d   :  { %1996 = vmatmul.bf16.vlgmr.msrb.gmra.mxu1 %v1451_v43  ;;  %v3940_v30 = vpop.permute.xlu0 %3939  ;;  %v3930_v62 = vpop.permute.xlu1 %3929  ;;  %v3976_v48 = vunpack.i.l.bf16 %v3975_v35  ;;  %v3977_v47 = vunpack.i.h.bf16 %v3975_v35 }
 0x26e   :  { %v3932_v61 = vunpack.i.h.bf16 %v3930_v62  ;;  %v3931_v52 = vunpack.i.l.bf16 %v3930_v62  ;;  %v3942_v63 = vunpack.i.h.bf16 %v3940_v30  ;;  %v3941_v3 = vunpack.i.l.bf16 %v3940_v30 }
 0x26f   :  { %v1263_v6 = vsel %vm1258_vm8, %v3896_v42, %v3976_v48  ;;  %v1264_v22 = vsel %vm1258_vm8, %v3897_v33, %v3977_v47 }
 0x270   :  { %v1400_v1 = vsel %vm1398_vm11, %v3922_v24, %v3932_v61  ;;  %v1399_v46 = vsel %vm1398_vm11, %v3921_v40, %v3931_v52  ;;  %v1344_v21 = vsel %vm1341_vm10, %v3941_v3, %v3942_v63  ;;  %v1436_v11 = vsel %vm1341_vm10, %v1261_v41, %v3941_v3 }
 0x271   :  { %v1454_v12 = vpack.c.bf16 %v1400_v1, %v1399_v46  ;;  %v1443_v30 = vsel %vm1398_vm11, %v3942_v63, %v3951_v17  ;;  %v1438_v53 = vsel %vm1341_vm10, %v1263_v6, %v3961_v5 }
 0x273   :  { %v1930_v39 = vpop.f32.mrf.mxu2 }
 0x275   :  { %v1245_v0 = vpop.permute.xlu0 %1244  ;;  %v3945_v56 = vpop.permute.xlu1 %3944 }
 0x276   :  { %v1262_v25 = vsel %vm1258_vm8, %v3882_v51, %v1245_v0  ;;  %v3947_v45 = vunpack.i.h.bf16 %v3945_v56  ;;  %v3946_v29 = vunpack.i.l.bf16 %v3945_v56 }
 0x278   :  { %v1345_v23 = vsel %vm1341_vm10, %v3946_v29, %v3947_v45  ;;  %v1437_v51 = vsel %vm1341_vm10, %v1262_v25, %v3946_v29  ;;  %v1444_v8 = vsel %vm1398_vm11, %v3947_v45, %v3952_v31  ;;  %v1914_v29 = vadd.f32 %v5394_v2, %v5242_v49 }
 0x279   :  { %v1459_v60 = vpack.c.bf16 %v1345_v23, %v1344_v21  ;;  %v1458_v54 = vpack.c.bf16 %v1437_v51, %v1436_v11  ;;  %v1460_v62 = vpack.c.bf16 %v1444_v8, %v1443_v30  ;;  %v1916_v21 = vadd.f32 %v5394_v2, %v5268_v9 }
 0x27a   :  { %v1926_v8 = vadd.f32 %v5394_v2, %v5368_v4 }
 0x27b   :  { %2029 = vmatmul.bf16.gmra.mxu2 %v1459_v60  ;;  %v1919_v60 = vadd.f32 %v5394_v2, %v5302_v18 }
 0x27c   :  { %2052 = vmatmul.bf16.vlgmr.msrb.gmra.mxu3 %v1453_v26  ;;  %3435 = vmatmul.msk.bf16.vlgmr.msra.gmra.mxu0 %vm1887_vm12, %v1454_v12 }
 0x27d   :  { %2001 = vmatmul.bf16.gmra.mxu1 %v1458_v54  ;;  %v3965_v50 = vpop.permute.xlu0 %3964  ;;  %v3955_v7 = vpop.permute.xlu1 %3954 }
 0x27e   :  { %v3967_v19 = vunpack.i.h.bf16 %v3965_v50  ;;  %v3966_v59 = vunpack.i.l.bf16 %v3965_v50  ;;  %v3957_v58 = vunpack.i.h.bf16 %v3955_v7  ;;  %v3956_v32 = vunpack.i.l.bf16 %v3955_v7 }
 0x280   :  { %v1347_v20 = vsel %vm1341_vm10, %v3966_v59, %v3967_v19  ;;  %v1402_v44 = vsel %vm1398_vm11, %v3952_v31, %v3957_v58  ;;  %v1401_v43 = vsel %vm1398_vm11, %v3951_v17, %v3956_v32  ;;  %v1439_v38 = vsel %vm1341_vm10, %v1264_v22, %v3966_v59 }
 0x281   :  { %v1466_v28 = vpack.c.bf16 %v1347_v20, %v1346_v55  ;;  %v1461_v42 = vpack.c.bf16 %v1402_v44, %v1401_v43  ;;  %v1465_v27 = vpack.c.bf16 %v1439_v38, %v1438_v53 }
 0x285   :  { %v3980_v33 = vpop.permute.xlu0 %3979  ;;  %v3970_v61 = vpop.permute.xlu1 %3969 }
 0x286   :  { %v3982_v52 = vunpack.i.h.bf16 %v3980_v33  ;;  %v3981_v39 = vunpack.i.l.bf16 %v3980_v33  ;;  %v3972_v14 = vunpack.i.h.bf16 %v3970_v61  ;;  %v3971_v3 = vunpack.i.l.bf16 %v3970_v61 }
 0x288   :  { %v1404_v24 = vsel %vm1398_vm11, %v3972_v14, %v3982_v52  ;;  %v1403_v63 = vsel %vm1398_vm11, %v3971_v3, %v3981_v39  ;;  %v1445_v40 = vsel %vm1398_vm11, %v3962_v36, %v3971_v3  ;;  %v1446_v0 = vsel %vm1398_vm11, %v3967_v19, %v3972_v14 }
 0x289   :  { %v1468_v56 = vpack.c.bf16 %v1404_v24, %v1403_v63  ;;  %v1467_v25 = vpack.c.bf16 %v1446_v0, %v1445_v40 }
 0x28b   :  { %2034 = vmatmul.bf16.gmra.mxu2 %v1466_v28 }
 0x28c   :  { %2057 = vmatmul.bf16.gmra.mxu3 %v1460_v62  ;;  %3436 = vmatmul.msk.bf16.gmra.mxu0 %vm1887_vm12, %v1461_v42 }
 0x28d   :  { %2006 = vmatmul.bf16.gmra.mxu1 %v1465_v27  ;;  %v1257_v12 = vpop.permute.xlu0 %1256 }
 0x28e   :  { %v1265_v9 = vsel %vm1258_vm8, %v3906_v16, %v1257_v12  ;;  %v1924_v16 = vadd.f32 %v5394_v2, %v5357_v34 }
 0x29c   :  { %2062 = vmatmul.bf16.gmra.mxu3 %v1467_v25  ;;  %3437 = vmatmul.msk.bf16.gmra.mxu0 %vm1887_vm12, %v1468_v56 }
 0x2b4   :  { %v1395_v19 = vpop.permute.xlu2 %1394 }
 0x2b9   :  { %v1969_v45 = vpop.f32.mrf.mxu0 }
 0x2be   :  { %v1941_v41 = vpop.f32.mrf.mxu3 }
 0x2bf   :  { %v1942_v37 = vadd.f32 %v1941_v41, %v1914_v29 }
 0x2c1   :  { %v1971_v1 = vpop.f32.mrf.mxu0  ;;  %v1970_v46 = vadd.f32 %v1969_v45, %v1942_v37 }
 0x2c6   :  { %v1943_v23 = vpop.f32.mrf.mxu3 }
 0x2c7   :  { %v1944_v11 = vadd.f32 %v1943_v23, %v1916_v21  ;;  %v1921_v23 = vadd.f32 %v5394_v2, %v5321_v13 }
 0x2c9   :  { %v1974_v51 = vpop.f32.mrf.mxu0  ;;  %v1972_v10 = vadd.f32 %v1971_v1, %v1944_v11 }
 0x2ce   :  { %v1946_v54 = vpop.f32.mrf.mxu3 }
 0x2cf   :  { %v1947_v26 = vadd.f32 %v1946_v54, %v1919_v60 }
 0x2d1   :  { %v3985_v35 = vpop.permute.xlu1 %3984  ;;  %v5450_v50 = vpop.f32.mrf.mxu0  ;;  %v1975_v49 = vadd.f32 %v1974_v51, %v1947_v26 }
 0x2d2   :  { %v3987_v7 = vunpack.i.h.bf16 %v3985_v35  ;;  %v3986_v48 = vunpack.i.l.bf16 %v3985_v35 }
 0x2d4   :  { %v1440_v59 = vsel %vm1341_vm10, %v1265_v9, %v3986_v48  ;;  %v1348_v47 = vsel %vm1341_vm10, %v3986_v48, %v3987_v7  ;;  %v1447_v18 = vsel %vm1398_vm11, %v3987_v7, %v1395_v19 }
 0x2d5   :  { %v1472_v58 = vpack.c.bf16 %v1440_v59, %v1440_v59  ;;  %v1473_v32 = vpack.c.bf16 %v1348_v47, %v1348_v47  ;;  %v1474_v36 = vpack.c.bf16 %v1447_v18, %v1447_v18 }
 0x2d6   :  { %v1948_v5 = vpop.f32.mrf.mxu3 }
 0x2d7   :  { %2011 = vmatmul.bf16.gmra.mxu1 %v1472_v58  ;;  %2039 = vmatmul.bf16.gmra.mxu2 %v1473_v32  ;;  %v1949_v60 = vadd.f32 %v1948_v5, %v1921_v23 }
 0x2d8   :  { %2067 = vmatmul.bf16.gmra.mxu3 %v1474_v36 }
 0x2d9   :  { %v1397_v31 = vpop.permute.xlu1 %1396  ;;  %v1979_v17 = vpop.f32.mrf.mxu0 }
 0x2da   :  { %v1405_v15 = vsel %vm1398_vm11, %v1395_v19, %v1397_v31  ;;  %v1977_v19 = vadd.f32 %v5450_v50, %v1949_v60 }
 0x2db   :  { %v1475_v6 = vpack.c.bf16 %v1405_v15, %v1405_v15 }
 0x2dd   :  { %3438 = vmatmul.msk.bf16.gmra.mxu0 %vm1887_vm12, %v1475_v6 }
 0x2df   :  { %v1951_v20 = vpop.f32.mrf.mxu3 }
 0x2e0   :  { %v1952_v22 = vadd.f32 %v1951_v20, %v1924_v16 }
 0x2e1   :  { %v1981_v44 = vpop.f32.mrf.mxu0 }
 0x2e2   :  { %v1980_v43 = vadd.f32 %v1979_v17, %v1952_v22 }
 0x2e7   :  { %v1953_v55 = vpop.f32.mrf.mxu3 }
 0x2e8   :  { %v1954_v38 = vadd.f32 %v1953_v55, %v1926_v8 }
 0x2e9   :  { %v1984_v28 = vpop.f32.mrf.mxu0 }
 0x2ea   :  { %v5464_v30 = vadd.f32 %v1981_v44, %v1954_v38  ;;  %v1997_v42 = vpop.f32.mrf.mxu1 }
 0x2eb   :  { %v1998_v3 = vadd.f32 %v1997_v42, %v1970_v46 }
 0x2ee   :  { %v2025_v27 = vpop.f32.mrf.mxu2 }
 0x2ef   :  { %v1956_v62 = vpop.f32.mrf.mxu3  ;;  %v2026_v4 = vadd.f32 %v2025_v27, %v1998_v3 }
 0x2f0   :  { %v1957_v53 = vadd.f32 %v1956_v62, %v5399_v57 }
 0x2f1   :  { %v1986_v33 = vpop.f32.mrf.mxu0 }
 0x2f2   :  { %v5467_v61 = vadd.f32 %v1984_v28, %v1957_v53  ;;  %v1999_v52 = vpop.f32.mrf.mxu1 }
 0x2f3   :  { %v2000_v56 = vadd.f32 %v1999_v52, %v1972_v10 }
 0x2f6   :  { %v2027_v14 = vpop.f32.mrf.mxu2 }
 0x2f7   :  { %v1958_v34 = vpop.f32.mrf.mxu3  ;;  %v2028_v45 = vadd.f32 %v2027_v14, %v2000_v56 }
 0x2f9   :  { %v2081_v39 = vpop.f32.mrf.mxu0 }
 0x2fa   :  { %v2002_v0 = vpop.f32.mrf.mxu1 }
 0x2fb   :  { %v2003_v11 = vadd.f32 %v2002_v0, %v1975_v49 }
 0x2fe   :  { %v2030_v25 = vpop.f32.mrf.mxu2 }
 0x2ff   :  { %v2053_v24 = vpop.f32.mrf.mxu3  ;;  %v2031_v54 = vadd.f32 %v2030_v25, %v2003_v11 }
 0x300   :  { %v2054_v40 = vadd.f32 %v2053_v24, %v2026_v4 }
 0x301   :  { %v2083_v63 = vpop.f32.mrf.mxu0 }
 0x302   :  { %v2082_v29 = vadd.f32 %v2081_v39, %v2054_v40  ;;  %v2004_v46 = vpop.f32.mrf.mxu1 }
 0x303   :  { %v2005_v47 = vadd.f32 %v2004_v46, %v1977_v19 }
 0x304   :  { %v2100_v37 = vmax.f32 %v2082_v29, 0.0 }
 0x306   :  { %v2114_v26 = vrot.slane %v2100_v37, 2  ;;  %v2032_v35 = vpop.f32.mrf.mxu2 }
 0x307   :  { %v2055_v41 = vpop.f32.mrf.mxu3  ;;  %v2033_v2 = vadd.f32 %v2032_v35, %v2005_v47 }
 0x308   :  { %v2056_v57 = vadd.f32 %v2055_v41, %v2028_v45 }
 0x309   :  { %v2086_v21 = vpop.f32.mrf.mxu0 }
 0x30a   :  { %v2084_v1 = vadd.f32 %v2083_v63, %v2056_v57  ;;  %v2007_v58 = vpop.f32.mrf.mxu1 }
 0x30b   :  { %v2008_v16 = vadd.f32 %v2007_v58, %v1980_v43 }
 0x30c   :  { %v2101_v51 = vmax.f32 %v2084_v1, 0.0 }
 0x30e   :  { %v2115_v12 = vrot.slane %v2101_v51, 2  ;;  %v2035_v31 = vpop.f32.mrf.mxu2 }
 0x30f   :  { %v2058_v10 = vpop.f32.mrf.mxu3  ;;  %v2036_v50 = vadd.f32 %v2035_v31, %v2008_v16 }
 0x310   :  { %v2059_v7 = vadd.f32 %v2058_v10, %v2031_v54  ;;  %v2116_v48 = vsel %vm140_vm3, %v2114_v26, %v2115_v12 }
 0x311   :  { %v5472_v9 = vmax.f32 %v2100_v37, %v2116_v48  ;;  %v2088_v13 = vpop.f32.mrf.mxu0 }
 0x312   :  { %v2087_v59 = vadd.f32 %v2086_v21, %v2059_v7  ;;  %v2009_v28 = vpop.f32.mrf.mxu1 }
 0x313   :  { %v2010_v27 = vadd.f32 %v2009_v28, %v5464_v30  ;;  %v3768_v28 = vld [vmem:[%s5721_s5 + $0x30] sm:$0xff] }
 0x314   :  { %v2102_v18 = vmax.f32 %v2087_v59, 0.0 }
 0x316   :  { %v2117_v49 = vrot.slane %v2102_v18, 2  ;;  %v2037_v53 = vpop.f32.mrf.mxu2 }
 0x317   :  { %v2060_v32 = vpop.f32.mrf.mxu3  ;;  %v2038_v33 = vadd.f32 %v2037_v53, %v2010_v27  ;;  %v3775_v53 = vld [vmem:[%s5721_s5 + $0x68] sm:$0xff]  ;;  %v3766_v27 = vld [vmem:[%s5721_s5 + $0x20] sm:$0xff] }
 0x318   :  { %v2061_v36 = vadd.f32 %v2060_v32, %v2033_v2  ;;  %v2118_v5 = vsel %vm140_vm3, %v2115_v12, %v2117_v49 }
 0x319   :  { %v2135_v17 = vmax.f32 %v2101_v51, %v2118_v5  ;;  %v2091_v44 = vpop.f32.mrf.mxu0 }
 0x31a   :  { %v2089_v15 = vadd.f32 %v2088_v13, %v2061_v36 }
 0x31b   :  { %v3988_v6 = vpack.i.bf16 %v2135_v17, %v5472_v9 }
 0x31c   :  { %v2103_v20 = vmax.f32 %v2089_v15, 0.0 }
 0x31d   :  { %3989 = vrot.lane.b32.xlu2 %v3988_v6, %s4073_s4 }
 0x31e   :  { %v2119_v22 = vrot.slane %v2103_v20, 2 }
 0x31f   :  { %v2063_v8 = vpop.f32.mrf.mxu3 }
 0x320   :  { %v2064_v55 = vadd.f32 %v2063_v8, %v2036_v50  ;;  %v2120_v38 = vsel %vm140_vm3, %v2117_v49, %v2119_v22 }
 0x321   :  { %v2136_v42 = vmax.f32 %v2102_v18, %v2120_v38  ;;  %v2093_v3 = vpop.f32.mrf.mxu0  ;;  %v3777_v38 = vld [vmem:[%s5721_s5 + $0x78] sm:$0xff] }
 0x322   :  { %v2092_v62 = vadd.f32 %v2091_v44, %v2064_v55  ;;  %v3769_v55 = vld [vmem:[%s5721_s5 + $0x38] sm:$0xff]  ;;  %2603 = vmatpush.bf16.msra.mxu2 %v3777_v38 }
 0x323   :  { %2152 = vrot.lane.b32.xlu0 %v2136_v42, %s4073_s4  ;;  %2580 = vmatpush.bf16.msra.mxu1 %v3769_v55 }
 0x324   :  { %v2104_v43 = vmax.f32 %v2092_v62, 0.0  ;;  %v3767_v62 = vld [vmem:[%s5721_s5 + $0x28] sm:$0xff] }
 0x326   :  { %v2121_v34 = vrot.slane %v2104_v43, 2 }
 0x327   :  { %v2065_v52 = vpop.f32.mrf.mxu3  ;;  %2581 = vmatpush.bf16.msra.mxu1 %v3768_v28 }
 0x328   :  { %v2066_v39 = vadd.f32 %v2065_v52, %v2038_v33  ;;  %v2122_v14 = vsel %vm140_vm3, %v2119_v22, %v2121_v34  ;;  %v3765_v52 = vld [vmem:[%s5721_s5 + $0x18] sm:$0xff] }
 0x329   :  { %v2137_v24 = vmax.f32 %v2103_v20, %v2122_v14 }
 0x32a   :  { %v2094_v4 = vadd.f32 %v2093_v3, %v2066_v39  ;;  %v3773_v39 = vld [vmem:[%s5721_s5 + $0x58] sm:$0xff] }
 0x32b   :  { %2582 = vmatpush.bf16.msra.mxu1 %v3767_v62  ;;  %v3794_v62 = vld [vmem:[%s5721_s5 + $0x100] sm:$0xff] }
 0x32c   :  { %v2105_v63 = vmax.f32 %v2094_v4, 0.0  ;;  %v3764_v4 = vld [vmem:[%s5721_s5 + $0x10] sm:$0xff] }
 0x32e   :  { %v2123_v40 = vrot.slane %v2105_v63, 2 }
 0x32f   :  { %2583 = vmatpush.bf16.msra.mxu1 %v3766_v27 }
 0x330   :  { %v2124_v0 = vsel %vm140_vm3, %v2121_v34, %v2123_v40 }
 0x331   :  { %v2138_v56 = vmax.f32 %v2104_v43, %v2124_v0  ;;  %v3774_v43 = vld [vmem:[%s5721_s5 + $0x60] sm:$0xff] }
 0x333   :  { %v3993_v25 = vpack.i.bf16 %v2138_v56, %v2137_v24  ;;  %2584 = vmatpush.bf16.msra.mxu1 %v3765_v52 }
 0x335   :  { %3994 = vrot.lane.b32.xlu1 %v3993_v25, %s4073_s4  ;;  %v3771_v25 = vld [vmem:[%s5721_s5 + $0x48] sm:$0xff] }
 0x337   :  { %2585 = vmatpush.bf16.msra.mxu1 %v3764_v4 }
 0x354   :  { %v2012_v45 = vpop.f32.mrf.mxu1 }
 0x355   :  { %v2013_v30 = vadd.f32 %v2012_v45, %v5467_v61  ;;  %v3785_v45 = vld [vmem:[%s5721_s5 + $0xb8] sm:$0xff] }
 0x356   :  { %2626 = vmatpush.bf16.msra.mxu3 %v3785_v45 }
 0x35a   :  { %v2040_v29 = vpop.f32.mrf.mxu2  ;;  %v2096_v41 = vpop.f32.mrf.mxu0 }
 0x35b   :  { %v2041_v57 = vadd.f32 %v2040_v29, %v2013_v30  ;;  %v2068_v37 = vpop.f32.mrf.mxu3  ;;  %v3762_v30 = vld [vmem:[%s5721_s5] sm:$0xff] }
 0x35c   :  { %v2014_v1 = vpop.f32.mrf.mxu1  ;;  %v3770_v29 = vld [vmem:[%s5721_s5 + $0x40] sm:$0xff] }
 0x35d   :  { %v2069_v21 = vadd.f32 %v2068_v37, %v2041_v57  ;;  %v3783_v57 = vld [vmem:[%s5721_s5 + $0xa8] sm:$0xff]  ;;  %v3782_v37 = vld [vmem:[%s5721_s5 + $0xa0] sm:$0xff]  ;;  %v3781_v1 = vld [vmem:[%s5721_s5 + $0x98] sm:$0xff] }
 0x35f   :  { %v2097_v23 = vadd.f32 %v2096_v41, %v2069_v21  ;;  %v3784_v41 = vld [vmem:[%s5721_s5 + $0xb0] sm:$0xff] }
 0x360   :  { %2627 = vmatpush.bf16.msra.mxu3 %v3784_v41  ;;  %v3780_v21 = vld [vmem:[%s5721_s5 + $0x90] sm:$0xff] }
 0x361   :  { %v2106_v11 = vmax.f32 %v2097_v23, 0.0  ;;  %v3793_v23 = vld [vmem:[%s5721_s5 + $0xf8] sm:$0xff] }
 0x362   :  { %v2042_v51 = vpop.f32.mrf.mxu2  ;;  %v2098_v46 = vpop.f32.mrf.mxu0 }
 0x363   :  { %v2125_v60 = vrot.slane %v2106_v11, 2  ;;  %v2070_v54 = vpop.f32.mrf.mxu3  ;;  %v3792_v51 = vld [vmem:[%s5721_s5 + $0xf0] sm:$0xff]  ;;  %v3778_v46 = vld [vmem:[%s5721_s5 + $0x80] sm:$0xff] }
 0x364   :  { %2628 = vmatpush.bf16.msra.mxu3 %v3783_v57  ;;  %v3791_v54 = vld [vmem:[%s5721_s5 + $0xe8] sm:$0xff] }
 0x365   :  { %v5485_v26 = vmax.f32 %v2106_v11, %v2125_v60  ;;  %v2126_v12 = vsel %vm140_vm3, %v2123_v40, %v2125_v60  ;;  %v3772_v40 = vld [vmem:[%s5721_s5 + $0x50] sm:$0xff]  ;;  %v3779_v11 = vld [vmem:[%s5721_s5 + $0x88] sm:$0xff] }
 0x366   :  { %v2139_v35 = vmax.f32 %v2105_v63, %v2126_v12 }
 0x368   :  { %2158 = vrot.lane.b32.xlu2 %v2139_v35, %s4073_s4  ;;  %2629 = vmatpush.bf16.msra.mxu3 %v3782_v37 }
 0x36c   :  { %2630 = vmatpush.bf16.msra.mxu3 %v3781_v1 }
 0x370   :  { %2631 = vmatpush.bf16.msra.mxu3 %v3780_v21 }
 0x374   :  { %2632 = vmatpush.bf16.msra.mxu3 %v3779_v11 }
 0x377   :  { %v3990_v61 = vpop.permute.xlu2 %3989 }
 0x378   :  { %v3992_v10 = vunpack.i.h.bf16 %v3990_v61  ;;  %v3991_v7 = vunpack.i.l.bf16 %v3990_v61  ;;  %2633 = vmatpush.bf16.msra.mxu3 %v3778_v46 }
 0x37a   :  { %v5489_v48 = vmax.f32 %v2135_v17, %v3992_v10  ;;  %v5492_v19 = vmax.f32 %v5472_v9, %v3991_v7 }
 0x37c   :  { %v2182_v47 = vrot.slane %v5489_v48, 4  ;;  %v2181_v18 = vrot.slane %v5492_v19, 4 }
 0x37e   :  { %v2183_v58 = vsel %vm1203_vm5, %v2181_v18, %v2182_v47 }
 0x395   :  { %v2153_v59 = vpop.permute.xlu0 %2152 }
 0x396   :  { %v5496_v13 = vmax.f32 %v2136_v42, %v2153_v59  ;;  %v3776_v42 = vld [vmem:[%s5721_s5 + $0x70] sm:$0xff] }
 0x397   :  { %2604 = vmatpush.bf16.msra.mxu2 %v3776_v42  ;;  %v3786_v42 = vld [vmem:[%s5721_s5 + $0xc0] sm:$0xff] }
 0x398   :  { %v2184_v2 = vrot.slane %v5496_v13, 4  ;;  %v4003_v49 = vpack.i.bf16 %v5496_v13, %v5489_v48 }
 0x39a   :  { %4004 = vrot.lane.b32.xlu1 %v4003_v49, %s4074_s1  ;;  %v2185_v9 = vsel %vm1203_vm5, %v2182_v47, %v2184_v2  ;;  %v3790_v49 = vld [vmem:[%s5721_s5 + $0xe0] sm:$0xff] }
 0x39b   :  { %v3998_v32 = vpack.i.bf16 %v2185_v9, %v2183_v58  ;;  %2605 = vmatpush.bf16.msra.mxu2 %v3775_v53 }
 0x39d   :  { %3999 = vrot.lane.b32.xlu0 %v3998_v32, %s4075_s25 }
 0x39f   :  { %2606 = vmatpush.bf16.msra.mxu2 %v3774_v43 }
 0x3a3   :  { %2607 = vmatpush.bf16.msra.mxu2 %v3773_v39 }
 0x3a7   :  { %v3995_v36 = vpop.permute.xlu1 %3994  ;;  %2608 = vmatpush.bf16.msra.mxu2 %v3772_v40 }
 0x3a8   :  { %v3997_v5 = vunpack.i.h.bf16 %v3995_v36  ;;  %v3996_v31 = vunpack.i.l.bf16 %v3995_v36 }
 0x3aa   :  { %v5504_v17 = vmax.f32 %v2138_v56, %v3997_v5  ;;  %v5506_v15 = vmax.f32 %v2137_v24, %v3996_v31  ;;  %v3763_v56 = vld [vmem:[%s5721_s5 + $0x8] sm:$0xff] }
 0x3ab   :  { %2586 = vmatpush.bf16.msra.mxu1 %v3763_v56  ;;  %2609 = vmatpush.bf16.msra.mxu2 %v3771_v25  ;;  %v3573_v31 = vld [vmem:[%s5721_s5 + $0x108] sm:$0xf] }
 0x3ac   :  { %v2188_v6 = vrot.slane %v5504_v17, 4  ;;  %v4013_v16 = vpack.i.bf16 %v5504_v17, %v5506_v15  ;;  %v2186_v20 = vrot.slane %v5506_v15, 4  ;;  %v4023_v0 = vpack.i.bf16 %v5506_v15, %v5496_v13 }
 0x3ae   :  { %2198 = vrot.lane.b32.xlu1 %v2188_v6, %s4075_s25  ;;  %4014 = vrot.lane.b32.xlu0 %v4013_v16, %s4074_s1  ;;  %v2187_v50 = vsel %vm1203_vm5, %v2184_v2, %v2186_v20  ;;  %v2189_v22 = vsel %vm1203_vm5, %v2186_v20, %v2188_v6  ;;  %v3787_v16 = vld [vmem:[%s5721_s5 + $0xc8] sm:$0xff] }
 0x3af   :  { %v4008_v44 = vpack.i.bf16 %v2189_v22, %v2187_v50  ;;  %v4018_v8 = vpack.i.bf16 %v2187_v50, %v2185_v9  ;;  %2587 = vmatpush.bf16.msra.mxu1 %v3762_v30  ;;  %2610 = vmatpush.bf16.msra.mxu2 %v3770_v29 }
 0x3b1   :  { %4009 = vrot.lane.b32.xlu2 %v4008_v44, %s4075_s25 }
 0x3b3   :  { %2649 = vmatpush.bf16.msrb.mxu1 %v3793_v23 }
 0x3b6   :  { %4019 = vrot.lane.b32.xlu1 %v4018_v8, %s4070_s13  ;;  %2160 = vrot.lane.b32.xlu0 %v5485_v26, %s4073_s4  ;;  %s4076_s4 = smov 48  }
 0x3b7   :  { %2650 = vmatpush.bf16.msrb.mxu1 %v3792_v51 }
 0x3bb   :  { %2651 = vmatpush.bf16.msrb.mxu1 %v3791_v54 }
 0x3bf   :  { %2652 = vmatpush.bf16.msrb.mxu1 %v3790_v49 }
 0x3c2   :  { %v2159_v33 = vpop.permute.xlu2 %2158 }
 0x3c3   :  { %v2174_v34 = vmax.f32 %v2139_v35, %v2159_v33 }
 0x3c5   :  { %v2221_v14 = vrot.slane %v2174_v34, 4  ;;  %2214 = vrot.lane.b32.xlu2 %v2174_v34, %s4074_s1  ;;  %v4033_v3 = vpack.i.bf16 %v2174_v34, %v5504_v17 }
 0x3c7   :  { %4034 = vrot.lane.b32.xlu1 %v4033_v3, %s4076_s4  ;;  %v2222_v24 = vsel %vm1203_vm5, %v2188_v6, %v2221_v14  ;;  %v3795_v6 = vld [vmem:[%s5721_s5 + $0x108] sm:$0x30] }
 0x3c8   :  { %v4028_v63 = vpack.i.bf16 %v2222_v24, %v2189_v22  ;;  %v3574_v20 = vor.u32 %v3795_v6, %v3573_v31 }
 0x3ca   :  { %4029 = vrot.lane.b32.xlu0 %v4028_v63, %s4070_s13  ;;  %v2578_v55 = vsel %vm140_vm3, %v3574_v20, 0 }
 0x3cb   :  { %2678 = vmatpush.bf16.msrb.mxu2 %v2578_v55 }
 0x3cd   :  { %4024 = vrot.lane.b32.xlu2 %v4023_v0, %s4076_s4 }
 0x3cf   :  { %2679 = vmatpush.bf16.msrb.mxu2 %v3794_v62 }
 0x3d5   :  { %2231 = vrot.lane.b32.xlu2 %v2221_v14, %s4070_s13 }
 0x40b   :  { %v4010_v32 = vpop.permute.xlu2 %4009 }
 0x40c   :  { %v4005_v60 = vpop.permute.xlu1 %4004  ;;  %v4012_v36 = vunpack.i.h.bf16 %v4010_v32  ;;  %v4011_v5 = vunpack.i.l.bf16 %v4010_v32 }
 0x40d   :  { %v4007_v35 = vunpack.i.h.bf16 %v4005_v60  ;;  %v4006_v61 = vunpack.i.l.bf16 %v4005_v60 }
 0x40e   :  { %v2257_v44 = vsel %vm2254_vm14, %v5496_v13, %v4011_v5  ;;  %v2258_v8 = vsel %vm2254_vm14, %v5506_v15, %v4012_v36 }
 0x40f   :  { %v4000_v12 = vpop.permute.xlu0 %3999  ;;  %v2282_v53 = vpack.c.bf16 %v2258_v8, %v2257_v44 }
 0x410   :  { %v4002_v10 = vunpack.i.h.bf16 %v4000_v12  ;;  %v4001_v7 = vunpack.i.l.bf16 %v4000_v12 }
 0x412   :  { %v2256_v59 = vsel %vm2254_vm14, %v5489_v48, %v4002_v10  ;;  %v2262_v47 = vsel %vm2260_vm13, %v4002_v10, %v4007_v35  ;;  %v2255_v18 = vsel %vm2254_vm14, %v5492_v19, %v4001_v7  ;;  %v2261_v2 = vsel %vm2260_vm13, %v4001_v7, %v4006_v61  ;;  %v3789_v48 = vld [vmem:[%s5721_s5 + $0xd8] sm:$0xff]  ;;  %v3788_v19 = vld [vmem:[%s5721_s5 + $0xd0] sm:$0xff] }
 0x413   :  { %v2277_v58 = vpack.c.bf16 %v2256_v59, %v2255_v18  ;;  %v2278_v9 = vpack.c.bf16 %v2262_v47, %v2261_v2  ;;  %2653 = vmatpush.bf16.msrb.mxu1 %v3789_v48  ;;  %v4039_v18 = vld [vmem:[%s5722_s6] ss:$0 sm:$0xff] }
 0x415   :  { %2588 = vmatmul.bf16.vlgmr.msra.gmra.mxu1 %v2277_v58  ;;  %2611 = vmatmul.bf16.vlgmr.msra.gmra.mxu2 %v2278_v9 }
 0x417   :  { %2654 = vmatpush.bf16.msrb.mxu1 %v3788_v19 }
 0x41b   :  { %2655 = vmatpush.bf16.msrb.mxu1 %v3787_v16 }
 0x41f   :  { %2656 = vmatpush.bf16.msrb.mxu1 %v3786_v42  ;;  %v2215_v4 = vpop.permute.xlu2 %2214 }
 0x420   :  { %v2199_v50 = vpop.permute.xlu1 %2198  ;;  %v4015_v22 = vpop.permute.xlu0 %4014 }
 0x421   :  { %v4017_v38 = vunpack.i.h.bf16 %v4015_v22  ;;  %v4016_v28 = vunpack.i.l.bf16 %v4015_v22  ;;  %v2259_v63 = vsel %vm2254_vm14, %v5504_v17, %v2199_v50  ;;  %v2265_v40 = vsel %vm2260_vm13, %v2199_v50, %v2215_v4 }
 0x422   :  { %v2287_v0 = vpack.c.bf16 %v2259_v63, %v2259_v63  ;;  %v2288_v56 = vpack.c.bf16 %v2265_v40, %v2265_v40 }
 0x423   :  { %v2263_v13 = vsel %vm2260_vm13, %v4011_v5, %v4016_v28  ;;  %v2264_v27 = vsel %vm2260_vm13, %v4012_v36, %v4017_v38 }
 0x424   :  { %v2283_v15 = vpack.c.bf16 %v2264_v27, %v2263_v13 }
 0x425   :  { %2593 = vmatmul.bf16.gmra.mxu1 %v2282_v53 }
 0x426   :  { %2616 = vmatmul.bf16.gmra.mxu2 %v2283_v15 }
 0x427   :  { %v4025_v25 = vpop.permute.xlu2 %4024 }
 0x428   :  { %v4020_v43 = vpop.permute.xlu1 %4019  ;;  %v2161_v33 = vpop.permute.xlu0 %2160  ;;  %v4026_v45 = vunpack.i.l.bf16 %v4025_v25 }
 0x429   :  { %v4022_v34 = vunpack.i.h.bf16 %v4020_v43  ;;  %v4021_v52 = vunpack.i.l.bf16 %v4020_v43  ;;  %v2175_v39 = vmax.f32 %v5485_v26, %v2161_v33  ;;  %v4027_v26 = vunpack.i.h.bf16 %v4025_v25 }
 0x42b   :  { %v2267_v14 = vsel %vm1258_vm8, %v4007_v35, %v4022_v34  ;;  %v2266_v3 = vsel %vm1258_vm8, %v4006_v61, %v4021_v52  ;;  %2247 = vrot.lane.b32.xlu0 %v2175_v39, %s4076_s4  ;;  %v2273_v1 = vsel %vm2271_vm15, %v4022_v34, %v4027_v26  ;;  %v2272_v17 = vsel %vm2271_vm15, %v4021_v52, %v4026_v45 }
 0x42c   :  { %v2279_v24 = vpack.c.bf16 %v2267_v14, %v2266_v3  ;;  %v2280_v23 = vpack.c.bf16 %v2273_v1, %v2272_v17  ;;  %v2281_v11 = vpack.c.bf16 %v4027_v26, %v4026_v45  ;;  %v3802_v1 = vld [vmem:[%s5723_s7 + $0x30] sm:$0xff] }
 0x42e   :  { %2634 = vmatmul.bf16.vlgmr.msra.gmra.mxu3 %v2279_v24 }
 0x42f   :  { %v2232_v51 = vpop.permute.xlu2 %2231 }
 0x430   :  { %v2270_v60 = vsel %vm1258_vm8, %v2215_v4, %v2232_v51 }
 0x431   :  { %v2289_v35 = vpack.c.bf16 %v2270_v60, %v2270_v60 }
 0x435   :  { %2598 = vmatmul.bf16.gmra.mxu1 %v2287_v0 }
 0x436   :  { %2621 = vmatmul.bf16.gmra.mxu2 %v2288_v56 }
 0x439   :  { %v4035_v46 = vpop.permute.xlu1 %4034 }
 0x43a   :  { %v4037_v54 = vunpack.i.h.bf16 %v4035_v46  ;;  %v4036_v12 = vunpack.i.l.bf16 %v4035_v46 }
 0x43c   :  { %v4030_v30 = vpop.permute.xlu0 %4029  ;;  %v2286_v59 = vpack.c.bf16 %v4037_v54, %v4036_v12 }
 0x43d   :  { %v4032_v29 = vunpack.i.h.bf16 %v4030_v30  ;;  %v4031_v41 = vunpack.i.l.bf16 %v4030_v30  ;;  %v2751_v30 = vld [vmem:[%s5723_s7 + $0x38] sm:$0xf] }
 0x43f   :  { %v2268_v57 = vsel %vm1258_vm8, %v4016_v28, %v4031_v41  ;;  %v2269_v37 = vsel %vm1258_vm8, %v4017_v38, %v4032_v29  ;;  %v2274_v61 = vsel %vm2271_vm15, %v4031_v41, %v4036_v12  ;;  %v2275_v10 = vsel %vm2271_vm15, %v4032_v29, %v4037_v54 }
 0x440   :  { %v2284_v21 = vpack.c.bf16 %v2269_v37, %v2268_v57  ;;  %v2285_v7 = vpack.c.bf16 %v2275_v10, %v2274_v61  ;;  %v2785_v29 = vunpack.c.l.b16 %v2751_v30 }
 0x442   :  { %2639 = vmatmul.bf16.gmra.mxu3 %v2284_v21  ;;  %v2793_v41 = vpack.c.b16 %v2785_v29, %v2785_v29  ;;  %v3801_v21 = vld [vmem:[%s5723_s7 + $0x28] sm:$0xff] }
 0x444   :  { %v2806_v37 = vsel %vm1203_vm5, %v2793_v41, 0  ;;  %vm2801_vm5 = vcmask 982016  }
 0x445   :  { %2657 = vmatmul.bf16.vlgmr.msrb.gmra.mxu1 %v2280_v23  ;;  %2808 = vmatpush.bf16.msrb.mxu0 %v2806_v37 }
 0x446   :  { %3575 = vmatmul.msk.bf16.vlgmr.msrb.gmra.mxu2 %vm2567_vm0, %v2281_v11  ;;  %v2700_v11 = vlaneseq }
 0x448   :  { %v2703_v12 = vshrl.u32 %v2700_v11, 7 }
 0x449   :  { %2809 = vmatpush.bf16.msrb.mxu0 %v3802_v1 }
 0x44d   :  { %2810 = vmatpush.bf16.msrb.mxu0 %v3801_v21 }
 0x452   :  { %2644 = vmatmul.bf16.gmra.mxu3 %v2289_v35  ;;  %v3799_v35 = vld [vmem:[%s5723_s7 + $0x18] sm:$0xff] }
 0x455   :  { %2662 = vmatmul.bf16.gmra.mxu1 %v2285_v7 }
 0x456   :  { %3576 = vmatmul.msk.bf16.gmra.mxu2 %vm2567_vm0, %v2286_v59 }
 0x492   :  { %v2589_v47 = vpop.f32.mrf.mxu1 }
 0x493   :  { %v2590_v2 = vadd.f32 %v4039_v18, %v2589_v47 }
 0x498   :  { %v2612_v49 = vpop.f32.mrf.mxu2 }
 0x499   :  { %v2613_v58 = vadd.f32 %v2612_v49, %v2590_v2  ;;  %v2701_v49 = vand.u32 127, %v2700_v11 }
 0x49a   :  { %v2591_v9 = vpop.f32.mrf.mxu1 }
 0x49b   :  { %v2592_v36 = vadd.f32 %v4039_v18, %v2591_v9  ;;  %v3798_v9 = vld [vmem:[%s5723_s7 + $0x10] sm:$0xff] }
 0x49d   :  { %v2248_v48 = vpop.permute.xlu0 %2247 }
 0x49e   :  { %v2276_v32 = vsel %vm2271_vm15, %v2232_v51, %v2248_v48  ;;  %v2291_v19 = vpack.c.bf16 %v2248_v48, %v2248_v48  ;;  %v3800_v51 = vld [vmem:[%s5723_s7 + $0x20] sm:$0xff] }
 0x49f   :  { %v2290_v5 = vpack.c.bf16 %v2276_v32, %v2276_v32  ;;  %2811 = vmatpush.bf16.msrb.mxu0 %v3800_v51 }
 0x4a0   :  { %v2614_v31 = vpop.f32.mrf.mxu2  ;;  %3577 = vmatmul.msk.bf16.gmra.mxu2 %vm2567_vm0, %v2291_v19 }
 0x4a1   :  { %v2615_v6 = vadd.f32 %v2614_v31, %v2592_v36  ;;  %2667 = vmatmul.bf16.gmra.mxu1 %v2290_v5 }
 0x4a2   :  { %v2594_v16 = vpop.f32.mrf.mxu1 }
 0x4a3   :  { %v2595_v20 = vadd.f32 %v4039_v18, %v2594_v16  ;;  %2812 = vmatpush.bf16.msrb.mxu0 %v3799_v35 }
 0x4a7   :  { %2813 = vmatpush.bf16.msrb.mxu0 %v3798_v9 }
 0x4a9   :  { %v2617_v50 = vpop.f32.mrf.mxu2 }
 0x4aa   :  { %v2618_v22 = vadd.f32 %v2617_v50, %v2595_v20  ;;  %v2596_v44 = vpop.f32.mrf.mxu1  ;;  %v4077_v50 = vmov 0.0  }
 0x4ab   :  { %v2597_v8 = vadd.f32 %v4039_v18, %v2596_v44  ;;  %v3796_v44 = vld [vmem:[%s5723_s7] sm:$0xff] }
 0x4b1   :  { %v2619_v55 = vpop.f32.mrf.mxu2  ;;  %v2635_v38 = vpop.f32.mrf.mxu3 }
 0x4b2   :  { %v2620_v28 = vadd.f32 %v2619_v55, %v2597_v8  ;;  %v2636_v42 = vadd.f32 %v2635_v38, %v2613_v58  ;;  %v2599_v62 = vpop.f32.mrf.mxu1  ;;  %v2704_v58 = vmul.u32 32, %v2703_v12  ;;  %v3624_v8 = vld [vmem:[%s5725_s9 + $0x18] sm:$0xf]  ;;  %v3806_v55 = vld [vmem:[%s5725_s9 + $0x18] sm:$0x30] }
 0x4b3   :  { %v2600_v53 = vadd.f32 %v4039_v18, %v2599_v62  ;;  %v3625_v38 = vor.u32 %v3806_v55, %v3624_v8 }
 0x4b4   :  { %vm2705_vm2 = vcmp.eq.s32.totalorder %v2701_v49, %v2704_v58 }
 0x4b9   :  { %v2622_v13 = vpop.f32.mrf.mxu2  ;;  %v2637_v27 = vpop.f32.mrf.mxu3 }
 0x4ba   :  { %v2623_v15 = vadd.f32 %v2622_v13, %v2600_v53  ;;  %v2638_v43 = vadd.f32 %v2637_v27, %v2615_v6  ;;  %v2601_v33 = vpop.f32.mrf.mxu1  ;;  %v3797_v6 = vld [vmem:[%s5723_s7 + $0x8] sm:$0xff]  ;;  %v3803_v27 = vld [vmem:[%s5725_s9] sm:$0xff] }
 0x4bb   :  { %2814 = vmatpush.bf16.msrb.mxu0 %v3797_v6  ;;  %v3804_v13 = vld [vmem:[%s5725_s9 + $0x8] sm:$0xff] }
 0x4bf   :  { %2815 = vmatpush.bf16.msrb.mxu0 %v3796_v44 }
 0x4c1   :  { %v2624_v34 = vpop.f32.mrf.mxu2 }
 0x4c2   :  { %v2658_v40 = vpop.f32.mrf.mxu1 }
 0x4c3   :  { %v2659_v48 = vadd.f32 %v2658_v40, %v2636_v42  ;;  %v3805_v42 = vld [vmem:[%s5725_s9 + $0x10] sm:$0xff] }
 0x4c5   :  { %v2640_v52 = vpop.f32.mrf.mxu3 }
 0x4c6   :  { %v2641_v39 = vadd.f32 %v2640_v52, %v2618_v22  ;;  %v3578_v22 = vsel %vm2705_vm2, 1.0, %v4077_v50 }
 0x4c9   :  { %v2681_v0 = vpop.f32.mrf.mxu2 }
 0x4ca   :  { %v2660_v56 = vpop.f32.mrf.mxu1  ;;  %v2682_v36 = vadd.f32 %v2681_v0, %v2659_v48 }
 0x4cb   :  { %v2661_v59 = vadd.f32 %v2660_v56, %v2638_v43 }
 0x4cc   :  { %v2695_v20 = vmax.f32 %v2682_v36, 0.0 }
 0x4cd   :  { %v2642_v14 = vpop.f32.mrf.mxu3 }
 0x4ce   :  { %v2643_v3 = vadd.f32 %v2642_v14, %v2620_v28  ;;  %v2863_v28 = vsel %vm140_vm3, %v3625_v38, 0  ;;  %vm2858_vm3 = vcmask 490496   ;;  %v4041_v14 = vld [vmem:[%s5726_s10] ss:$0 sm:$0xff] }
 0x4d1   :  { %v2683_v25 = vpop.f32.mrf.mxu2 }
 0x4d2   :  { %v2663_v26 = vpop.f32.mrf.mxu1  ;;  %v2684_v32 = vadd.f32 %v2683_v25, %v2661_v59 }
 0x4d3   :  { %v2664_v61 = vadd.f32 %v2663_v26, %v2641_v39 }
 0x4d4   :  { %v2696_v16 = vmax.f32 %v2684_v32, 0.0 }
 0x4d5   :  { %v2645_v24 = vpop.f32.mrf.mxu3 }
 0x4d6   :  { %v2646_v4 = vadd.f32 %v2645_v24, %v2623_v15  ;;  %v4040_v15 = vld [vmem:[%s5724_s8] ss:$0 sm:$0xff] }
 0x4d9   :  { %v2686_v45 = vpop.f32.mrf.mxu2 }
 0x4da   :  { %v2665_v57 = vpop.f32.mrf.mxu1  ;;  %v2687_v47 = vadd.f32 %v2686_v45, %v2664_v61 }
 0x4db   :  { %v2666_v46 = vadd.f32 %v2665_v57, %v2643_v3 }
 0x4dc   :  { %v2697_v5 = vmax.f32 %v2687_v47, 0.0 }
 0x4dd   :  { %v2647_v63 = vpop.f32.mrf.mxu3 }
 0x4e1   :  { %v2688_v17 = vpop.f32.mrf.mxu2 }
 0x4e2   :  { %v2689_v10 = vadd.f32 %v2688_v17, %v2666_v46 }
 0x4e4   :  { %v2698_v19 = vmax.f32 %v2689_v10, 0.0 }
 0x51e   :  { %v2668_v23 = vpop.f32.mrf.mxu1 }
 0x51f   :  { %v2669_v60 = vadd.f32 %v2668_v23, %v2646_v4 }
 0x523   :  { %v2691_v54 = vpop.f32.mrf.mxu2 }
 0x524   :  { %v2692_v7 = vadd.f32 %v2691_v54, %v2669_v60 }
 0x526   :  { %v2699_v18 = vmax.f32 %v2692_v7, 0.0  ;;  %v2670_v2 = vpop.f32.mrf.mxu1 }
 0x528   :  { %3579 = vmatpush.msk.msrb.mxu3 %vm2712_vm1, %v2699_v18 }
 0x52a   :  { %2728 = vmatpush.msrb.mxu3 %v2698_v19 }
 0x52b   :  { %v2693_v31 = vpop.f32.mrf.mxu2 }
 0x52c   :  { %2729 = vmatpush.msrb.mxu3 %v2697_v5 }
 0x52e   :  { %2730 = vmatpush.msrb.mxu3 %v2696_v16 }
 0x530   :  { %2731 = vmatpush.msrb.mxu3 %v2695_v20 }
 0x531   :  { %3580 = vmatmul.msk.f32.vlgmr.msrb.gmra.mxu3 %vm2708_vm4, %v3578_v22 }
 0x532   :  { %2869 = vmatpush.bf16.msra.mxu3 %v2863_v28 }
 0x536   :  { %2870 = vmatpush.bf16.msra.mxu3 %v3805_v42 }
 0x53a   :  { %2871 = vmatpush.bf16.msra.mxu3 %v3804_v13 }
 0x53e   :  { %2872 = vmatpush.bf16.msra.mxu3 %v3803_v27 }
 0x5b4   :  { %v2733_v62 = vpop.f32.mrf.mxu3 }
 0x5b5   :  { %v2736_v53 = vpack.c.bf16 %v2733_v62, %v2733_v62 }
 0x5b7   :  { %3609 = vmatmul.msk.bf16.vlgmr.msrb.gmra.mxu0 %vm2801_vm5, %v2736_v53 }
 0x634   :  { %v2817_v43 = vpop.f32.mrf.mxu0 }
 0x635   :  { %v2818_v33 = vadd.f32 %v4040_v15, %v2817_v43 }
 0x637   :  { %v2821_v34 = vmax.f32 %v2818_v33, 0.0 }
 0x639   :  { %v2822_v52 = vpack.c.bf16 %v2821_v34, %v2821_v34 }
 0x63b   :  { %3626 = vmatmul.msk.bf16.vlgmr.msra.gmra.mxu3 %vm2858_vm3, %v2822_v52 }
 0x63c   :  { %v2819_v39 = vpop.f32.mrf.mxu0 }
 0x6be   :  { %v2874_v3 = vpop.f32.mrf.mxu3 }
 0x6bf   :  { %v2875_v24 = vadd.f32 %v4041_v14, %v2874_v3 }
 0x6c1   :  { %2878 = vst [vmem:[#allocation2] sm:$0x3] %v2875_v24 }
 0x6c2   :  { %2889 = dma.vmem_to_hbm [thread:$0]  %s2885_s12, 32, %s2887_s15, [#allocation3]  }
 0x6c6   :  { %v2876_v4 = vpop.f32.mrf.mxu3 }
 0x6c7   :  { %4066 = dma.done.wait [#allocation3], 32  }
 0x6c8   :  { %4067 = vsyncadd [#allocation3], 4294967264 }
 0x6c9   :  { %2894 = vsyncpa [#allocation3], 1 }

</bundles_post_ra>
